<compile_context>
chip_gen: v5e
topology: v5e:2x2
jax: 0.10.0
libtpu: 0.0.40
codegen_flags: <defaults>
</compile_context>

<pallas_src>
import functools

import jax
import jax.numpy as jnp
from jax import lax
from jax.experimental import pallas as pl
from jax.experimental.pallas import tpu as pltpu


# --------------------------- Fused NER kernel ---------------------------- #
def _fused_ner_kernel(x_ref, *refs, hidden, num_layers, seq_len, batch_pad):
    """Fused BiLSTM (num_layers, both directions) + Linear classifier.

    refs = layer slabs (num_layers), classifier slab, out ref.
    Layer-0 slab rows:   [0:2H) W_in, [2H:4H) W_hh, [4H] bias.
    Layer>=1 slab rows:  [0:2H) W_a, [2H:4H) W_b, [4H:6H) W_hh, [6H] bias.
    Classifier slab rows:[0:2H) W_a, [2H:4H) W_b, [4H] bias.
    Gate columns (8H): [i_f, i_b, f_f, f_b, o_f, o_b, g_f, g_b]; sigmoid
    columns pre-scaled by 0.5 host-side (sigmoid(z) = 0.5*tanh(z/2)+0.5).
    """
    H = hidden
    T = seq_len
    Bp = batch_pad
    H2, H4, H6, H8 = 2 * H, 4 * H, 6 * H, 8 * H

    layer_slabs = refs[:num_layers]
    cls_ref = refs[num_layers]
    out_ref = refs[num_layers + 1]

    def recur(gates_x, w_hh):
        """gates_x: (T*Bp, 8H); row-block t already holds forward gates for
        time t and backward gates for time T-1-t. Returns (fwd, rev) views of
        the layer output kept entirely in registers:
          fwd row-block t = [h_f(t) | h_b(T-1-t)]
          rev row-block t = [h_f(T-1-t) | h_b(t)]
        """
        hc = jnp.zeros((Bp, H2), jnp.float32)   # [h_f | h_b]
        cc = jnp.zeros((Bp, H2), jnp.float32)   # [c_f | c_b]
        outs = []
        for t in range(T):  # fully unrolled; T is static & small
            g = gates_x[t * Bp:(t + 1) * Bp, :] + jnp.dot(
                hc, w_hh, preferred_element_type=jnp.float32)   # (Bp, 8H)
            ta = jnp.tanh(g)                      # ONE full-slab EUP op
            sig = ta * 0.5 + 0.5                  # sigmoid via tanh identity
            i = sig[:, 0:H2]
            f = sig[:, H2:H4]
            o = sig[:, H4:H6]
            gg = ta[:, H6:H8]
            cc = f * cc + i * gg
            hc = o * jnp.tanh(cc)                 # one (Bp, 2H) EUP op
            outs.append(hc)
        fwd = jnp.concatenate(outs, axis=0)       # axis-0 only: no lane moves
        rev = jnp.concatenate(outs[::-1], axis=0)
        return fwd, rev

    # Layer 0: x_ref row-block t = [x(t) | x(T-1-t)]  -> single input matmul.
    slab0 = layer_slabs[0]
    gates_x = (jnp.dot(x_ref[...], slab0[0:H2, :],
                       preferred_element_type=jnp.float32)
               + slab0[H4:H4 + 1, :])
    fwd, rev = recur(gates_x, slab0[H2:H4, :])

    # Deeper layers: hoisted projection as two matmuls (fwd/rev row orders).
    for l in range(1, num_layers):
        slab = layer_slabs[l]
        gates_x = (jnp.dot(fwd, slab[0:H2, :],
                           preferred_element_type=jnp.float32)
                   + jnp.dot(rev, slab[H2:H4, :],
                             preferred_element_type=jnp.float32)
                   + slab[H6:H6 + 1, :])
        fwd, rev = recur(gates_x, slab[H4:H6, :])

    # Classifier: logits(t) = h_f(t) @ W[:H] + h_b(t) @ W[H:] + b.
    logits = (jnp.dot(fwd, cls_ref[0:H2, :], preferred_element_type=jnp.float32)
              + jnp.dot(rev, cls_ref[H2:H4, :],
                        preferred_element_type=jnp.float32)
              + cls_ref[H4:H4 + 1, :])
    out_ref[...] = logits.astype(out_ref.dtype)   # (T*Bp, 128): lane-dense


# ------------------------- One-time weight packing ------------------------ #
def _combine_gate_cols(fw, bw, H):
    """fw/bw: (..., 4H) in PyTorch gate order [i, f, g, o] ->
    (..., 8H) columns [i_f, i_b, f_f, f_b, o_f, o_b, g_f, g_b]."""
    parts = []
    for gi in (0, 1, 3, 2):   # i, f, o, g
        parts.append(fw[..., gi * H:(gi + 1) * H])
        parts.append(bw[..., gi * H:(gi + 1) * H])
    return jnp.concatenate(parts, axis=-1)


def prepare_params(params, *, hidden, num_layers, class_num):
    """Pack/permute/scale all weights once (outside the per-call wrapper)."""
    H = hidden
    c_pad = max(128, ((class_num + 127) // 128) * 128)
    # Pre-scale sigmoid gate columns (i, f, o = first 6H) by 0.5.
    scale = jnp.concatenate([jnp.full((6 * H,), 0.5, jnp.float32),
                             jnp.ones((2 * H,), jnp.float32)])[None, :]
    zero_h = jnp.zeros((H, 4 * H), jnp.float32)

    slabs = []
    for l, layer in enumerate(params["lstm"]):
        fw, bw = layer["fw"], layer["bw"]
        w_hh = jnp.concatenate(
            [_combine_gate_cols(fw["w_hh"], zero_h, H),
             _combine_gate_cols(zero_h, bw["w_hh"], H)], axis=0)      # (2H,8H)
        bias = _combine_gate_cols((fw["b_ih"] + fw["b_hh"])[None, :],
                                  (bw["b_ih"] + bw["b_hh"])[None, :], H)
        if l == 0:
            # LHS row-block t = [x(t) | x(T-1-t)]
            w_in = jnp.concatenate(
                [_combine_gate_cols(fw["w_ih"], zero_h, H),
                 _combine_gate_cols(zero_h, bw["w_ih"], H)], axis=0)  # (2H,8H)
            slab = jnp.concatenate([w_in, w_hh, bias], axis=0)
        else:
            # fwd LHS row t = [h_f(t) | h_b(T-1-t)]  -> W_a
            # rev LHS row t = [h_f(T-1-t) | h_b(t)]  -> W_b
            w_a = jnp.concatenate(
                [_combine_gate_cols(fw["w_ih"][0:H], zero_h, H),
                 _combine_gate_cols(zero_h, bw["w_ih"][H:2 * H], H)], axis=0)
            w_b = jnp.concatenate(
                [_combine_gate_cols(zero_h, bw["w_ih"][0:H], H),
                 _combine_gate_cols(fw["w_ih"][H:2 * H], zero_h, H)], axis=0)
            slab = jnp.concatenate([w_a, w_b, w_hh, bias], axis=0)
        slabs.append(slab * scale)

    w_cls = params["classify_w"]                 # (2H, C)
    cls_slab = jnp.zeros((4 * H + 1, c_pad), jnp.float32)
    cls_slab = cls_slab.at[0:H, 0:class_num].set(w_cls[0:H])          # h_f part
    cls_slab = cls_slab.at[3 * H:4 * H, 0:class_num].set(w_cls[H:2 * H])  # h_b
    cls_slab = cls_slab.at[4 * H, 0:class_num].set(params["classify_b"])
    return {"embedding": params["embedding"],
            "layer_slabs": tuple(slabs),
            "cls_slab": cls_slab}


# ------------------------------ Forward ---------------------------------- #
def torch_model_forward(prepared, x_ids, *, hidden, num_layers, class_num):
    """x_ids: (B, T) int32 token ids. Returns logits (B, T, class_num)."""
    B, T = x_ids.shape
    H = hidden
    Bp = max(8, ((B + 7) // 8) * 8)               # sublane-pad batch
    c_pad = prepared["cls_slab"].shape[1]

    # Embedding lookup stays outside the kernel (table never enters VMEM).
    emb = jnp.take(prepared["embedding"], x_ids, axis=0)   # (B, T, H)
    x = jnp.transpose(emb, (1, 0, 2))                       # (T, B, H)
    x = jnp.pad(x, ((0, 0), (0, Bp - B), (0, 0)))           # (T, Bp, H)
    x_comb = jnp.concatenate([x, x[::-1]], axis=-1)         # (T, Bp, 2H)
    x_flat = x_comb.reshape(T * Bp, 2 * H).astype(jnp.float32)

    vmem = pl.BlockSpec(memory_space=pltpu.MemorySpace.VMEM)
    kernel = functools.partial(_fused_ner_kernel, hidden=H,
                               num_layers=num_layers, seq_len=T, batch_pad=Bp)
    out = pl.pallas_call(
        kernel,
        out_shape=jax.ShapeDtypeStruct((T * Bp, c_pad), jnp.float32),
        in_specs=[vmem] * (num_layers + 2),
        out_specs=vmem,
    )(x_flat, *prepared["layer_slabs"], prepared["cls_slab"])

    logits = out.reshape(T, Bp, c_pad)[:, :B, :class_num]   # (T, B, C)
    return jnp.transpose(logits, (1, 0, 2))                 # (B, T, C)


# --------------------------- Parameter init ------------------------------ #
def init_params(key, vocab_size_plus1, hidden, num_layers, class_num):
    params = {}
    key, k_emb = jax.random.split(key)
    emb = jax.random.normal(k_emb, (vocab_size_plus1, hidden), jnp.float32)
    emb = emb.at[0].set(0.0)  # padding_idx=0
    params["embedding"] = emb

    k = hidden ** -0.5
    lstm_layers = []
    for layer in range(num_layers):
        in_size = hidden if layer == 0 else 2 * hidden
        layer_p = {}
        for direction in ("fw", "bw"):
            key, k1, k2, k3, k4 = jax.random.split(key, 5)
            layer_p[direction] = {
                # stored transposed vs PyTorch: (In, 4H) / (H, 4H) so x @ W
                # maps directly onto the MXU. Gate order [i, f, g, o].
                "w_ih": jax.random.uniform(k1, (in_size, 4 * hidden),
                                           jnp.float32, -k, k),
                "w_hh": jax.random.uniform(k2, (hidden, 4 * hidden),
                                           jnp.float32, -k, k),
                "b_ih": jax.random.uniform(k3, (4 * hidden,), jnp.float32, -k, k),
                "b_hh": jax.random.uniform(k4, (4 * hidden,), jnp.float32, -k, k),
            }
        lstm_layers.append(layer_p)
    params["lstm"] = lstm_layers

    key, kw, kb = jax.random.split(key, 3)
    lin_k = (2 * hidden) ** -0.5
    params["classify_w"] = jax.random.uniform(
        kw, (2 * hidden, class_num), jnp.float32, -lin_k, lin_k)
    params["classify_b"] = jax.random.uniform(
        kb, (class_num,), jnp.float32, -lin_k, lin_k)
    return params


# -------------------------- Pure-JAX reference --------------------------- #
def _ref_lstm_direction(x_tbf, p, hidden):
    H = hidden
    b = p["b_ih"] + p["b_hh"]

    def step(carry, x_t):
        h, c = carry
        gates = x_t @ p["w_ih"] + h @ p["w_hh"] + b
        i = jax.nn.sigmoid(gates[:, 0:H])
        f = jax.nn.sigmoid(gates[:, H:2 * H])
        g = jnp.tanh(gates[:, 2 * H:3 * H])
        o = jax.nn.sigmoid(gates[:, 3 * H:4 * H])
        c = f * c + i * g
        h = o * jnp.tanh(c)
        return (h, c), h

    B = x_tbf.shape[1]
    init = (jnp.zeros((B, H), jnp.float32), jnp.zeros((B, H), jnp.float32))
    _, hs = lax.scan(step, init, x_tbf)
    return hs


def reference_forward(params, x_ids, hidden):
    emb = jnp.take(params["embedding"], x_ids, axis=0)
    h = jnp.transpose(emb, (1, 0, 2))
    for layer in params["lstm"]:
        fw = _ref_lstm_direction(h, layer["fw"], hidden)
        bw = _ref_lstm_direction(h[::-1], layer["bw"], hidden)[::-1]
        h = jnp.concatenate([fw, bw], axis=-1)
    logits = jnp.einsum("tbf,fc->tbc", h, params["classify_w"]) \
        + params["classify_b"]
    return jnp.transpose(logits, (1, 0, 2))


if __name__ == "__main__":
    config = {
        "hidden_size": 32,
        "vocab_size": 20,     # embedding table has vocab_size + 1 rows
        "max_length": 8,
        "class_num": 9,
        "num_layers": 2,
        "use_crf": False,
    }
    B = 2
    T = config["max_length"]
    H = config["hidden_size"]

    key = jax.random.PRNGKey(0)
    key, k_ids = jax.random.split(key)
    params = init_params(key, config["vocab_size"] + 1, H,
                         config["num_layers"], config["class_num"])
    prepared = prepare_params(params, hidden=H,
                              num_layers=config["num_layers"],
                              class_num=config["class_num"])
    x = jax.random.randint(k_ids, (B, T), 0, config["vocab_size"] + 1,
                           dtype=jnp.int32)

    logits = torch_model_forward(prepared, x, hidden=H,
                                 num_layers=config["num_layers"],
                                 class_num=config["class_num"])
    logits = jax.block_until_ready(logits)
    assert logits.shape == (B, T, config["class_num"])
    assert logits.dtype == jnp.float32

    # Sanity check against a pure-JAX f32 reference.
    ref = reference_forward(params, x, H)
    max_err = float(jnp.max(jnp.abs(logits - ref)))
    assert max_err < 0.1, f"max abs error {max_err}"
    print("KERNEL_OK")
</pallas_src>

<mosaic_0001>
module attributes {stable_mosaic.version = 11 : i64} {
  func.func @_fused_ner_kernel(%arg0: memref<64x64xf32, #tpu.memory_space<vmem>>, %arg1: memref<129x256xf32, #tpu.memory_space<vmem>>, %arg2: memref<193x256xf32, #tpu.memory_space<vmem>>, %arg3: memref<129x128xf32, #tpu.memory_space<vmem>>, %arg4: memref<64x128xf32, #tpu.memory_space<vmem>>) attributes {dimension_semantics = [], scalar_prefetch = 0 : i64, scratch_operands = 0 : i64, tpu.core_type = #tpu.core_type<tc>} {
    %c0 = arith.constant 0 : index
    %c0_0 = arith.constant 0 : index
    %0 = vector.load %arg0[%c0, %c0_0] : memref<64x64xf32, #tpu.memory_space<vmem>>, vector<64x64xf32>
    %c0_1 = arith.constant 0 : index
    %c0_2 = arith.constant 0 : index
    %1 = vector.load %arg1[%c0_1, %c0_2] : memref<129x256xf32, #tpu.memory_space<vmem>>, vector<64x256xf32>
    %cst = arith.constant dense<0.000000e+00> : vector<64x256xf32>
    %2 = tpu.matmul %0, %1, %cst {dimension_numbers = #tpu.dot_dimension_numbers<[1], [0], [0], [1], [0, 0, 1, 1], [], []>} : vector<64x64xf32>, vector<64x256xf32>, vector<64x256xf32> -> vector<64x256xf32>
    %c128 = arith.constant 128 : index
    %c0_3 = arith.constant 0 : index
    %3 = vector.load %arg1[%c128, %c0_3] : memref<129x256xf32, #tpu.memory_space<vmem>>, vector<1x256xf32>
    %4 = vector.broadcast %3 : vector<1x256xf32> to vector<64x256xf32>
    %5 = arith.addf %2, %4 : vector<64x256xf32>
    %c64 = arith.constant 64 : index
    %c0_4 = arith.constant 0 : index
    %6 = vector.load %arg1[%c64, %c0_4] : memref<129x256xf32, #tpu.memory_space<vmem>>, vector<64x256xf32>
    %cst_5 = arith.constant 0.000000e+00 : f32
    %7 = vector.broadcast %cst_5 : f32 to vector<8x64xf32>
    %cst_6 = arith.constant 0.000000e+00 : f32
    %8 = vector.broadcast %cst_6 : f32 to vector<8x64xf32>
    %9 = vector.extract_strided_slice %5 {offsets = [0, 0], sizes = [8, 256], strides = [1, 1]} : vector<64x256xf32> to vector<8x256xf32>
    %cst_7 = arith.constant dense<0.000000e+00> : vector<8x256xf32>
    %10 = tpu.matmul %7, %6, %cst_7 {dimension_numbers = #tpu.dot_dimension_numbers<[1], [0], [0], [1], [0, 0, 1, 1], [], []>} : vector<8x64xf32>, vector<64x256xf32>, vector<8x256xf32> -> vector<8x256xf32>
    %11 = arith.addf %9, %10 : vector<8x256xf32>
    %12 = math.tanh %11 : vector<8x256xf32>
    %cst_8 = arith.constant 5.000000e-01 : f32
    %13 = vector.broadcast %cst_8 : f32 to vector<8x256xf32>
    %14 = arith.mulf %12, %13 : vector<8x256xf32>
    %cst_9 = arith.constant 5.000000e-01 : f32
    %15 = vector.broadcast %cst_9 : f32 to vector<8x256xf32>
    %16 = arith.addf %14, %15 : vector<8x256xf32>
    %17 = vector.extract_strided_slice %16 {offsets = [0, 0], sizes = [8, 64], strides = [1, 1]} : vector<8x256xf32> to vector<8x64xf32>
    %18 = vector.extract_strided_slice %16 {offsets = [0, 64], sizes = [8, 64], strides = [1, 1]} : vector<8x256xf32> to vector<8x64xf32>
    %19 = vector.extract_strided_slice %16 {offsets = [0, 128], sizes = [8, 64], strides = [1, 1]} : vector<8x256xf32> to vector<8x64xf32>
    %20 = vector.extract_strided_slice %12 {offsets = [0, 192], sizes = [8, 64], strides = [1, 1]} : vector<8x256xf32> to vector<8x64xf32>
    %21 = arith.mulf %18, %8 : vector<8x64xf32>
    %22 = arith.mulf %17, %20 : vector<8x64xf32>
    %23 = arith.addf %21, %22 : vector<8x64xf32>
    %24 = math.tanh %23 : vector<8x64xf32>
    %25 = arith.mulf %19, %24 : vector<8x64xf32>
    %26 = vector.extract_strided_slice %5 {offsets = [8, 0], sizes = [8, 256], strides = [1, 1]} : vector<64x256xf32> to vector<8x256xf32>
    %cst_10 = arith.constant dense<0.000000e+00> : vector<8x256xf32>
    %27 = tpu.matmul %25, %6, %cst_10 {dimension_numbers = #tpu.dot_dimension_numbers<[1], [0], [0], [1], [0, 0, 1, 1], [], []>} : vector<8x64xf32>, vector<64x256xf32>, vector<8x256xf32> -> vector<8x256xf32>
    %28 = arith.addf %26, %27 : vector<8x256xf32>
    %29 = math.tanh %28 : vector<8x256xf32>
    %cst_11 = arith.constant 5.000000e-01 : f32
    %30 = vector.broadcast %cst_11 : f32 to vector<8x256xf32>
    %31 = arith.mulf %29, %30 : vector<8x256xf32>
    %cst_12 = arith.constant 5.000000e-01 : f32
    %32 = vector.broadcast %cst_12 : f32 to vector<8x256xf32>
    %33 = arith.addf %31, %32 : vector<8x256xf32>
    %34 = vector.extract_strided_slice %33 {offsets = [0, 0], sizes = [8, 64], strides = [1, 1]} : vector<8x256xf32> to vector<8x64xf32>
    %35 = vector.extract_strided_slice %33 {offsets = [0, 64], sizes = [8, 64], strides = [1, 1]} : vector<8x256xf32> to vector<8x64xf32>
    %36 = vector.extract_strided_slice %33 {offsets = [0, 128], sizes = [8, 64], strides = [1, 1]} : vector<8x256xf32> to vector<8x64xf32>
    %37 = vector.extract_strided_slice %29 {offsets = [0, 192], sizes = [8, 64], strides = [1, 1]} : vector<8x256xf32> to vector<8x64xf32>
    %38 = arith.mulf %35, %23 : vector<8x64xf32>
    %39 = arith.mulf %34, %37 : vector<8x64xf32>
    %40 = arith.addf %38, %39 : vector<8x64xf32>
    %41 = math.tanh %40 : vector<8x64xf32>
    %42 = arith.mulf %36, %41 : vector<8x64xf32>
    %43 = vector.extract_strided_slice %5 {offsets = [16, 0], sizes = [8, 256], strides = [1, 1]} : vector<64x256xf32> to vector<8x256xf32>
    %cst_13 = arith.constant dense<0.000000e+00> : vector<8x256xf32>
    %44 = tpu.matmul %42, %6, %cst_13 {dimension_numbers = #tpu.dot_dimension_numbers<[1], [0], [0], [1], [0, 0, 1, 1], [], []>} : vector<8x64xf32>, vector<64x256xf32>, vector<8x256xf32> -> vector<8x256xf32>
    %45 = arith.addf %43, %44 : vector<8x256xf32>
    %46 = math.tanh %45 : vector<8x256xf32>
    %cst_14 = arith.constant 5.000000e-01 : f32
    %47 = vector.broadcast %cst_14 : f32 to vector<8x256xf32>
    %48 = arith.mulf %46, %47 : vector<8x256xf32>
    %cst_15 = arith.constant 5.000000e-01 : f32
    %49 = vector.broadcast %cst_15 : f32 to vector<8x256xf32>
    %50 = arith.addf %48, %49 : vector<8x256xf32>
    %51 = vector.extract_strided_slice %50 {offsets = [0, 0], sizes = [8, 64], strides = [1, 1]} : vector<8x256xf32> to vector<8x64xf32>
    %52 = vector.extract_strided_slice %50 {offsets = [0, 64], sizes = [8, 64], strides = [1, 1]} : vector<8x256xf32> to vector<8x64xf32>
    %53 = vector.extract_strided_slice %50 {offsets = [0, 128], sizes = [8, 64], strides = [1, 1]} : vector<8x256xf32> to vector<8x64xf32>
    %54 = vector.extract_strided_slice %46 {offsets = [0, 192], sizes = [8, 64], strides = [1, 1]} : vector<8x256xf32> to vector<8x64xf32>
    %55 = arith.mulf %52, %40 : vector<8x64xf32>
    %56 = arith.mulf %51, %54 : vector<8x64xf32>
    %57 = arith.addf %55, %56 : vector<8x64xf32>
    %58 = math.tanh %57 : vector<8x64xf32>
    %59 = arith.mulf %53, %58 : vector<8x64xf32>
    %60 = vector.extract_strided_slice %5 {offsets = [24, 0], sizes = [8, 256], strides = [1, 1]} : vector<64x256xf32> to vector<8x256xf32>
    %cst_16 = arith.constant dense<0.000000e+00> : vector<8x256xf32>
    %61 = tpu.matmul %59, %6, %cst_16 {dimension_numbers = #tpu.dot_dimension_numbers<[1], [0], [0], [1], [0, 0, 1, 1], [], []>} : vector<8x64xf32>, vector<64x256xf32>, vector<8x256xf32> -> vector<8x256xf32>
    %62 = arith.addf %60, %61 : vector<8x256xf32>
    %63 = math.tanh %62 : vector<8x256xf32>
    %cst_17 = arith.constant 5.000000e-01 : f32
    %64 = vector.broadcast %cst_17 : f32 to vector<8x256xf32>
    %65 = arith.mulf %63, %64 : vector<8x256xf32>
    %cst_18 = arith.constant 5.000000e-01 : f32
    %66 = vector.broadcast %cst_18 : f32 to vector<8x256xf32>
    %67 = arith.addf %65, %66 : vector<8x256xf32>
    %68 = vector.extract_strided_slice %67 {offsets = [0, 0], sizes = [8, 64], strides = [1, 1]} : vector<8x256xf32> to vector<8x64xf32>
    %69 = vector.extract_strided_slice %67 {offsets = [0, 64], sizes = [8, 64], strides = [1, 1]} : vector<8x256xf32> to vector<8x64xf32>
    %70 = vector.extract_strided_slice %67 {offsets = [0, 128], sizes = [8, 64], strides = [1, 1]} : vector<8x256xf32> to vector<8x64xf32>
    %71 = vector.extract_strided_slice %63 {offsets = [0, 192], sizes = [8, 64], strides = [1, 1]} : vector<8x256xf32> to vector<8x64xf32>
    %72 = arith.mulf %69, %57 : vector<8x64xf32>
    %73 = arith.mulf %68, %71 : vector<8x64xf32>
    %74 = arith.addf %72, %73 : vector<8x64xf32>
    %75 = math.tanh %74 : vector<8x64xf32>
    %76 = arith.mulf %70, %75 : vector<8x64xf32>
    %77 = vector.extract_strided_slice %5 {offsets = [32, 0], sizes = [8, 256], strides = [1, 1]} : vector<64x256xf32> to vector<8x256xf32>
    %cst_19 = arith.constant dense<0.000000e+00> : vector<8x256xf32>
    %78 = tpu.matmul %76, %6, %cst_19 {dimension_numbers = #tpu.dot_dimension_numbers<[1], [0], [0], [1], [0, 0, 1, 1], [], []>} : vector<8x64xf32>, vector<64x256xf32>, vector<8x256xf32> -> vector<8x256xf32>
    %79 = arith.addf %77, %78 : vector<8x256xf32>
    %80 = math.tanh %79 : vector<8x256xf32>
    %cst_20 = arith.constant 5.000000e-01 : f32
    %81 = vector.broadcast %cst_20 : f32 to vector<8x256xf32>
    %82 = arith.mulf %80, %81 : vector<8x256xf32>
    %cst_21 = arith.constant 5.000000e-01 : f32
    %83 = vector.broadcast %cst_21 : f32 to vector<8x256xf32>
    %84 = arith.addf %82, %83 : vector<8x256xf32>
    %85 = vector.extract_strided_slice %84 {offsets = [0, 0], sizes = [8, 64], strides = [1, 1]} : vector<8x256xf32> to vector<8x64xf32>
    %86 = vector.extract_strided_slice %84 {offsets = [0, 64], sizes = [8, 64], strides = [1, 1]} : vector<8x256xf32> to vector<8x64xf32>
    %87 = vector.extract_strided_slice %84 {offsets = [0, 128], sizes = [8, 64], strides = [1, 1]} : vector<8x256xf32> to vector<8x64xf32>
    %88 = vector.extract_strided_slice %80 {offsets = [0, 192], sizes = [8, 64], strides = [1, 1]} : vector<8x256xf32> to vector<8x64xf32>
    %89 = arith.mulf %86, %74 : vector<8x64xf32>
    %90 = arith.mulf %85, %88 : vector<8x64xf32>
    %91 = arith.addf %89, %90 : vector<8x64xf32>
    %92 = math.tanh %91 : vector<8x64xf32>
    %93 = arith.mulf %87, %92 : vector<8x64xf32>
    %94 = vector.extract_strided_slice %5 {offsets = [40, 0], sizes = [8, 256], strides = [1, 1]} : vector<64x256xf32> to vector<8x256xf32>
    %cst_22 = arith.constant dense<0.000000e+00> : vector<8x256xf32>
    %95 = tpu.matmul %93, %6, %cst_22 {dimension_numbers = #tpu.dot_dimension_numbers<[1], [0], [0], [1], [0, 0, 1, 1], [], []>} : vector<8x64xf32>, vector<64x256xf32>, vector<8x256xf32> -> vector<8x256xf32>
    %96 = arith.addf %94, %95 : vector<8x256xf32>
    %97 = math.tanh %96 : vector<8x256xf32>
    %cst_23 = arith.constant 5.000000e-01 : f32
    %98 = vector.broadcast %cst_23 : f32 to vector<8x256xf32>
    %99 = arith.mulf %97, %98 : vector<8x256xf32>
    %cst_24 = arith.constant 5.000000e-01 : f32
    %100 = vector.broadcast %cst_24 : f32 to vector<8x256xf32>
    %101 = arith.addf %99, %100 : vector<8x256xf32>
    %102 = vector.extract_strided_slice %101 {offsets = [0, 0], sizes = [8, 64], strides = [1, 1]} : vector<8x256xf32> to vector<8x64xf32>
    %103 = vector.extract_strided_slice %101 {offsets = [0, 64], sizes = [8, 64], strides = [1, 1]} : vector<8x256xf32> to vector<8x64xf32>
    %104 = vector.extract_strided_slice %101 {offsets = [0, 128], sizes = [8, 64], strides = [1, 1]} : vector<8x256xf32> to vector<8x64xf32>
    %105 = vector.extract_strided_slice %97 {offsets = [0, 192], sizes = [8, 64], strides = [1, 1]} : vector<8x256xf32> to vector<8x64xf32>
    %106 = arith.mulf %103, %91 : vector<8x64xf32>
    %107 = arith.mulf %102, %105 : vector<8x64xf32>
    %108 = arith.addf %106, %107 : vector<8x64xf32>
    %109 = math.tanh %108 : vector<8x64xf32>
    %110 = arith.mulf %104, %109 : vector<8x64xf32>
    %111 = vector.extract_strided_slice %5 {offsets = [48, 0], sizes = [8, 256], strides = [1, 1]} : vector<64x256xf32> to vector<8x256xf32>
    %cst_25 = arith.constant dense<0.000000e+00> : vector<8x256xf32>
    %112 = tpu.matmul %110, %6, %cst_25 {dimension_numbers = #tpu.dot_dimension_numbers<[1], [0], [0], [1], [0, 0, 1, 1], [], []>} : vector<8x64xf32>, vector<64x256xf32>, vector<8x256xf32> -> vector<8x256xf32>
    %113 = arith.addf %111, %112 : vector<8x256xf32>
    %114 = math.tanh %113 : vector<8x256xf32>
    %cst_26 = arith.constant 5.000000e-01 : f32
    %115 = vector.broadcast %cst_26 : f32 to vector<8x256xf32>
    %116 = arith.mulf %114, %115 : vector<8x256xf32>
    %cst_27 = arith.constant 5.000000e-01 : f32
    %117 = vector.broadcast %cst_27 : f32 to vector<8x256xf32>
    %118 = arith.addf %116, %117 : vector<8x256xf32>
    %119 = vector.extract_strided_slice %118 {offsets = [0, 0], sizes = [8, 64], strides = [1, 1]} : vector<8x256xf32> to vector<8x64xf32>
    %120 = vector.extract_strided_slice %118 {offsets = [0, 64], sizes = [8, 64], strides = [1, 1]} : vector<8x256xf32> to vector<8x64xf32>
    %121 = vector.extract_strided_slice %118 {offsets = [0, 128], sizes = [8, 64], strides = [1, 1]} : vector<8x256xf32> to vector<8x64xf32>
    %122 = vector.extract_strided_slice %114 {offsets = [0, 192], sizes = [8, 64], strides = [1, 1]} : vector<8x256xf32> to vector<8x64xf32>
    %123 = arith.mulf %120, %108 : vector<8x64xf32>
    %124 = arith.mulf %119, %122 : vector<8x64xf32>
    %125 = arith.addf %123, %124 : vector<8x64xf32>
    %126 = math.tanh %125 : vector<8x64xf32>
    %127 = arith.mulf %121, %126 : vector<8x64xf32>
    %128 = vector.extract_strided_slice %5 {offsets = [56, 0], sizes = [8, 256], strides = [1, 1]} : vector<64x256xf32> to vector<8x256xf32>
    %cst_28 = arith.constant dense<0.000000e+00> : vector<8x256xf32>
    %129 = tpu.matmul %127, %6, %cst_28 {dimension_numbers = #tpu.dot_dimension_numbers<[1], [0], [0], [1], [0, 0, 1, 1], [], []>} : vector<8x64xf32>, vector<64x256xf32>, vector<8x256xf32> -> vector<8x256xf32>
    %130 = arith.addf %128, %129 : vector<8x256xf32>
    %131 = math.tanh %130 : vector<8x256xf32>
    %cst_29 = arith.constant 5.000000e-01 : f32
    %132 = vector.broadcast %cst_29 : f32 to vector<8x256xf32>
    %133 = arith.mulf %131, %132 : vector<8x256xf32>
    %cst_30 = arith.constant 5.000000e-01 : f32
    %134 = vector.broadcast %cst_30 : f32 to vector<8x256xf32>
    %135 = arith.addf %133, %134 : vector<8x256xf32>
    %136 = vector.extract_strided_slice %135 {offsets = [0, 0], sizes = [8, 64], strides = [1, 1]} : vector<8x256xf32> to vector<8x64xf32>
    %137 = vector.extract_strided_slice %135 {offsets = [0, 64], sizes = [8, 64], strides = [1, 1]} : vector<8x256xf32> to vector<8x64xf32>
    %138 = vector.extract_strided_slice %135 {offsets = [0, 128], sizes = [8, 64], strides = [1, 1]} : vector<8x256xf32> to vector<8x64xf32>
    %139 = vector.extract_strided_slice %131 {offsets = [0, 192], sizes = [8, 64], strides = [1, 1]} : vector<8x256xf32> to vector<8x64xf32>
    %140 = arith.mulf %137, %125 : vector<8x64xf32>
    %141 = arith.mulf %136, %139 : vector<8x64xf32>
    %142 = arith.addf %140, %141 : vector<8x64xf32>
    %143 = math.tanh %142 : vector<8x64xf32>
    %144 = arith.mulf %138, %143 : vector<8x64xf32>
    %145 = tpu.concatenate %25, %42, %59, %76, %93, %110, %127, %144 in 0 : vector<8x64xf32>, vector<8x64xf32>, vector<8x64xf32>, vector<8x64xf32>, vector<8x64xf32>, vector<8x64xf32>, vector<8x64xf32>, vector<8x64xf32> -> vector<64x64xf32>
    %146 = tpu.concatenate %144, %127, %110, %93, %76, %59, %42, %25 in 0 : vector<8x64xf32>, vector<8x64xf32>, vector<8x64xf32>, vector<8x64xf32>, vector<8x64xf32>, vector<8x64xf32>, vector<8x64xf32>, vector<8x64xf32> -> vector<64x64xf32>
    %c0_31 = arith.constant 0 : index
    %c0_32 = arith.constant 0 : index
    %147 = vector.load %arg2[%c0_31, %c0_32] : memref<193x256xf32, #tpu.memory_space<vmem>>, vector<64x256xf32>
    %cst_33 = arith.constant dense<0.000000e+00> : vector<64x256xf32>
    %148 = tpu.matmul %145, %147, %cst_33 {dimension_numbers = #tpu.dot_dimension_numbers<[1], [0], [0], [1], [0, 0, 1, 1], [], []>} : vector<64x64xf32>, vector<64x256xf32>, vector<64x256xf32> -> vector<64x256xf32>
    %c64_34 = arith.constant 64 : index
    %c0_35 = arith.constant 0 : index
    %149 = vector.load %arg2[%c64_34, %c0_35] : memref<193x256xf32, #tpu.memory_space<vmem>>, vector<64x256xf32>
    %cst_36 = arith.constant dense<0.000000e+00> : vector<64x256xf32>
    %150 = tpu.matmul %146, %149, %cst_36 {dimension_numbers = #tpu.dot_dimension_numbers<[1], [0], [0], [1], [0, 0, 1, 1], [], []>} : vector<64x64xf32>, vector<64x256xf32>, vector<64x256xf32> -> vector<64x256xf32>
    %151 = arith.addf %148, %150 : vector<64x256xf32>
    %c192 = arith.constant 192 : index
    %c0_37 = arith.constant 0 : index
    %152 = vector.load %arg2[%c192, %c0_37] : memref<193x256xf32, #tpu.memory_space<vmem>>, vector<1x256xf32>
    %153 = vector.broadcast %152 : vector<1x256xf32> to vector<64x256xf32>
    %154 = arith.addf %151, %153 : vector<64x256xf32>
    %c128_38 = arith.constant 128 : index
    %c0_39 = arith.constant 0 : index
    %155 = vector.load %arg2[%c128_38, %c0_39] : memref<193x256xf32, #tpu.memory_space<vmem>>, vector<64x256xf32>
    %cst_40 = arith.constant 0.000000e+00 : f32
    %156 = vector.broadcast %cst_40 : f32 to vector<8x64xf32>
    %cst_41 = arith.constant 0.000000e+00 : f32
    %157 = vector.broadcast %cst_41 : f32 to vector<8x64xf32>
    %158 = vector.extract_strided_slice %154 {offsets = [0, 0], sizes = [8, 256], strides = [1, 1]} : vector<64x256xf32> to vector<8x256xf32>
    %cst_42 = arith.constant dense<0.000000e+00> : vector<8x256xf32>
    %159 = tpu.matmul %156, %155, %cst_42 {dimension_numbers = #tpu.dot_dimension_numbers<[1], [0], [0], [1], [0, 0, 1, 1], [], []>} : vector<8x64xf32>, vector<64x256xf32>, vector<8x256xf32> -> vector<8x256xf32>
    %160 = arith.addf %158, %159 : vector<8x256xf32>
    %161 = math.tanh %160 : vector<8x256xf32>
    %cst_43 = arith.constant 5.000000e-01 : f32
    %162 = vector.broadcast %cst_43 : f32 to vector<8x256xf32>
    %163 = arith.mulf %161, %162 : vector<8x256xf32>
    %cst_44 = arith.constant 5.000000e-01 : f32
    %164 = vector.broadcast %cst_44 : f32 to vector<8x256xf32>
    %165 = arith.addf %163, %164 : vector<8x256xf32>
    %166 = vector.extract_strided_slice %165 {offsets = [0, 0], sizes = [8, 64], strides = [1, 1]} : vector<8x256xf32> to vector<8x64xf32>
    %167 = vector.extract_strided_slice %165 {offsets = [0, 64], sizes = [8, 64], strides = [1, 1]} : vector<8x256xf32> to vector<8x64xf32>
    %168 = vector.extract_strided_slice %165 {offsets = [0, 128], sizes = [8, 64], strides = [1, 1]} : vector<8x256xf32> to vector<8x64xf32>
    %169 = vector.extract_strided_slice %161 {offsets = [0, 192], sizes = [8, 64], strides = [1, 1]} : vector<8x256xf32> to vector<8x64xf32>
    %170 = arith.mulf %167, %157 : vector<8x64xf32>
    %171 = arith.mulf %166, %169 : vector<8x64xf32>
    %172 = arith.addf %170, %171 : vector<8x64xf32>
    %173 = math.tanh %172 : vector<8x64xf32>
    %174 = arith.mulf %168, %173 : vector<8x64xf32>
    %175 = vector.extract_strided_slice %154 {offsets = [8, 0], sizes = [8, 256], strides = [1, 1]} : vector<64x256xf32> to vector<8x256xf32>
    %cst_45 = arith.constant dense<0.000000e+00> : vector<8x256xf32>
    %176 = tpu.matmul %174, %155, %cst_45 {dimension_numbers = #tpu.dot_dimension_numbers<[1], [0], [0], [1], [0, 0, 1, 1], [], []>} : vector<8x64xf32>, vector<64x256xf32>, vector<8x256xf32> -> vector<8x256xf32>
    %177 = arith.addf %175, %176 : vector<8x256xf32>
    %178 = math.tanh %177 : vector<8x256xf32>
    %cst_46 = arith.constant 5.000000e-01 : f32
    %179 = vector.broadcast %cst_46 : f32 to vector<8x256xf32>
    %180 = arith.mulf %178, %179 : vector<8x256xf32>
    %cst_47 = arith.constant 5.000000e-01 : f32
    %181 = vector.broadcast %cst_47 : f32 to vector<8x256xf32>
    %182 = arith.addf %180, %181 : vector<8x256xf32>
    %183 = vector.extract_strided_slice %182 {offsets = [0, 0], sizes = [8, 64], strides = [1, 1]} : vector<8x256xf32> to vector<8x64xf32>
    %184 = vector.extract_strided_slice %182 {offsets = [0, 64], sizes = [8, 64], strides = [1, 1]} : vector<8x256xf32> to vector<8x64xf32>
    %185 = vector.extract_strided_slice %182 {offsets = [0, 128], sizes = [8, 64], strides = [1, 1]} : vector<8x256xf32> to vector<8x64xf32>
    %186 = vector.extract_strided_slice %178 {offsets = [0, 192], sizes = [8, 64], strides = [1, 1]} : vector<8x256xf32> to vector<8x64xf32>
    %187 = arith.mulf %184, %172 : vector<8x64xf32>
    %188 = arith.mulf %183, %186 : vector<8x64xf32>
    %189 = arith.addf %187, %188 : vector<8x64xf32>
    %190 = math.tanh %189 : vector<8x64xf32>
    %191 = arith.mulf %185, %190 : vector<8x64xf32>
    %192 = vector.extract_strided_slice %154 {offsets = [16, 0], sizes = [8, 256], strides = [1, 1]} : vector<64x256xf32> to vector<8x256xf32>
    %cst_48 = arith.constant dense<0.000000e+00> : vector<8x256xf32>
    %193 = tpu.matmul %191, %155, %cst_48 {dimension_numbers = #tpu.dot_dimension_numbers<[1], [0], [0], [1], [0, 0, 1, 1], [], []>} : vector<8x64xf32>, vector<64x256xf32>, vector<8x256xf32> -> vector<8x256xf32>
    %194 = arith.addf %192, %193 : vector<8x256xf32>
    %195 = math.tanh %194 : vector<8x256xf32>
    %cst_49 = arith.constant 5.000000e-01 : f32
    %196 = vector.broadcast %cst_49 : f32 to vector<8x256xf32>
    %197 = arith.mulf %195, %196 : vector<8x256xf32>
    %cst_50 = arith.constant 5.000000e-01 : f32
    %198 = vector.broadcast %cst_50 : f32 to vector<8x256xf32>
    %199 = arith.addf %197, %198 : vector<8x256xf32>
    %200 = vector.extract_strided_slice %199 {offsets = [0, 0], sizes = [8, 64], strides = [1, 1]} : vector<8x256xf32> to vector<8x64xf32>
    %201 = vector.extract_strided_slice %199 {offsets = [0, 64], sizes = [8, 64], strides = [1, 1]} : vector<8x256xf32> to vector<8x64xf32>
    %202 = vector.extract_strided_slice %199 {offsets = [0, 128], sizes = [8, 64], strides = [1, 1]} : vector<8x256xf32> to vector<8x64xf32>
    %203 = vector.extract_strided_slice %195 {offsets = [0, 192], sizes = [8, 64], strides = [1, 1]} : vector<8x256xf32> to vector<8x64xf32>
    %204 = arith.mulf %201, %189 : vector<8x64xf32>
    %205 = arith.mulf %200, %203 : vector<8x64xf32>
    %206 = arith.addf %204, %205 : vector<8x64xf32>
    %207 = math.tanh %206 : vector<8x64xf32>
    %208 = arith.mulf %202, %207 : vector<8x64xf32>
    %209 = vector.extract_strided_slice %154 {offsets = [24, 0], sizes = [8, 256], strides = [1, 1]} : vector<64x256xf32> to vector<8x256xf32>
    %cst_51 = arith.constant dense<0.000000e+00> : vector<8x256xf32>
    %210 = tpu.matmul %208, %155, %cst_51 {dimension_numbers = #tpu.dot_dimension_numbers<[1], [0], [0], [1], [0, 0, 1, 1], [], []>} : vector<8x64xf32>, vector<64x256xf32>, vector<8x256xf32> -> vector<8x256xf32>
    %211 = arith.addf %209, %210 : vector<8x256xf32>
    %212 = math.tanh %211 : vector<8x256xf32>
    %cst_52 = arith.constant 5.000000e-01 : f32
    %213 = vector.broadcast %cst_52 : f32 to vector<8x256xf32>
    %214 = arith.mulf %212, %213 : vector<8x256xf32>
    %cst_53 = arith.constant 5.000000e-01 : f32
    %215 = vector.broadcast %cst_53 : f32 to vector<8x256xf32>
    %216 = arith.addf %214, %215 : vector<8x256xf32>
    %217 = vector.extract_strided_slice %216 {offsets = [0, 0], sizes = [8, 64], strides = [1, 1]} : vector<8x256xf32> to vector<8x64xf32>
    %218 = vector.extract_strided_slice %216 {offsets = [0, 64], sizes = [8, 64], strides = [1, 1]} : vector<8x256xf32> to vector<8x64xf32>
    %219 = vector.extract_strided_slice %216 {offsets = [0, 128], sizes = [8, 64], strides = [1, 1]} : vector<8x256xf32> to vector<8x64xf32>
    %220 = vector.extract_strided_slice %212 {offsets = [0, 192], sizes = [8, 64], strides = [1, 1]} : vector<8x256xf32> to vector<8x64xf32>
    %221 = arith.mulf %218, %206 : vector<8x64xf32>
    %222 = arith.mulf %217, %220 : vector<8x64xf32>
    %223 = arith.addf %221, %222 : vector<8x64xf32>
    %224 = math.tanh %223 : vector<8x64xf32>
    %225 = arith.mulf %219, %224 : vector<8x64xf32>
    %226 = vector.extract_strided_slice %154 {offsets = [32, 0], sizes = [8, 256], strides = [1, 1]} : vector<64x256xf32> to vector<8x256xf32>
    %cst_54 = arith.constant dense<0.000000e+00> : vector<8x256xf32>
    %227 = tpu.matmul %225, %155, %cst_54 {dimension_numbers = #tpu.dot_dimension_numbers<[1], [0], [0], [1], [0, 0, 1, 1], [], []>} : vector<8x64xf32>, vector<64x256xf32>, vector<8x256xf32> -> vector<8x256xf32>
    %228 = arith.addf %226, %227 : vector<8x256xf32>
    %229 = math.tanh %228 : vector<8x256xf32>
    %cst_55 = arith.constant 5.000000e-01 : f32
    %230 = vector.broadcast %cst_55 : f32 to vector<8x256xf32>
    %231 = arith.mulf %229, %230 : vector<8x256xf32>
    %cst_56 = arith.constant 5.000000e-01 : f32
    %232 = vector.broadcast %cst_56 : f32 to vector<8x256xf32>
    %233 = arith.addf %231, %232 : vector<8x256xf32>
    %234 = vector.extract_strided_slice %233 {offsets = [0, 0], sizes = [8, 64], strides = [1, 1]} : vector<8x256xf32> to vector<8x64xf32>
    %235 = vector.extract_strided_slice %233 {offsets = [0, 64], sizes = [8, 64], strides = [1, 1]} : vector<8x256xf32> to vector<8x64xf32>
    %236 = vector.extract_strided_slice %233 {offsets = [0, 128], sizes = [8, 64], strides = [1, 1]} : vector<8x256xf32> to vector<8x64xf32>
    %237 = vector.extract_strided_slice %229 {offsets = [0, 192], sizes = [8, 64], strides = [1, 1]} : vector<8x256xf32> to vector<8x64xf32>
    %238 = arith.mulf %235, %223 : vector<8x64xf32>
    %239 = arith.mulf %234, %237 : vector<8x64xf32>
    %240 = arith.addf %238, %239 : vector<8x64xf32>
    %241 = math.tanh %240 : vector<8x64xf32>
    %242 = arith.mulf %236, %241 : vector<8x64xf32>
    %243 = vector.extract_strided_slice %154 {offsets = [40, 0], sizes = [8, 256], strides = [1, 1]} : vector<64x256xf32> to vector<8x256xf32>
    %cst_57 = arith.constant dense<0.000000e+00> : vector<8x256xf32>
    %244 = tpu.matmul %242, %155, %cst_57 {dimension_numbers = #tpu.dot_dimension_numbers<[1], [0], [0], [1], [0, 0, 1, 1], [], []>} : vector<8x64xf32>, vector<64x256xf32>, vector<8x256xf32> -> vector<8x256xf32>
    %245 = arith.addf %243, %244 : vector<8x256xf32>
    %246 = math.tanh %245 : vector<8x256xf32>
    %cst_58 = arith.constant 5.000000e-01 : f32
    %247 = vector.broadcast %cst_58 : f32 to vector<8x256xf32>
    %248 = arith.mulf %246, %247 : vector<8x256xf32>
    %cst_59 = arith.constant 5.000000e-01 : f32
    %249 = vector.broadcast %cst_59 : f32 to vector<8x256xf32>
    %250 = arith.addf %248, %249 : vector<8x256xf32>
    %251 = vector.extract_strided_slice %250 {offsets = [0, 0], sizes = [8, 64], strides = [1, 1]} : vector<8x256xf32> to vector<8x64xf32>
    %252 = vector.extract_strided_slice %250 {offsets = [0, 64], sizes = [8, 64], strides = [1, 1]} : vector<8x256xf32> to vector<8x64xf32>
    %253 = vector.extract_strided_slice %250 {offsets = [0, 128], sizes = [8, 64], strides = [1, 1]} : vector<8x256xf32> to vector<8x64xf32>
    %254 = vector.extract_strided_slice %246 {offsets = [0, 192], sizes = [8, 64], strides = [1, 1]} : vector<8x256xf32> to vector<8x64xf32>
    %255 = arith.mulf %252, %240 : vector<8x64xf32>
    %256 = arith.mulf %251, %254 : vector<8x64xf32>
    %257 = arith.addf %255, %256 : vector<8x64xf32>
    %258 = math.tanh %257 : vector<8x64xf32>
    %259 = arith.mulf %253, %258 : vector<8x64xf32>
    %260 = vector.extract_strided_slice %154 {offsets = [48, 0], sizes = [8, 256], strides = [1, 1]} : vector<64x256xf32> to vector<8x256xf32>
    %cst_60 = arith.constant dense<0.000000e+00> : vector<8x256xf32>
    %261 = tpu.matmul %259, %155, %cst_60 {dimension_numbers = #tpu.dot_dimension_numbers<[1], [0], [0], [1], [0, 0, 1, 1], [], []>} : vector<8x64xf32>, vector<64x256xf32>, vector<8x256xf32> -> vector<8x256xf32>
    %262 = arith.addf %260, %261 : vector<8x256xf32>
    %263 = math.tanh %262 : vector<8x256xf32>
    %cst_61 = arith.constant 5.000000e-01 : f32
    %264 = vector.broadcast %cst_61 : f32 to vector<8x256xf32>
    %265 = arith.mulf %263, %264 : vector<8x256xf32>
    %cst_62 = arith.constant 5.000000e-01 : f32
    %266 = vector.broadcast %cst_62 : f32 to vector<8x256xf32>
    %267 = arith.addf %265, %266 : vector<8x256xf32>
    %268 = vector.extract_strided_slice %267 {offsets = [0, 0], sizes = [8, 64], strides = [1, 1]} : vector<8x256xf32> to vector<8x64xf32>
    %269 = vector.extract_strided_slice %267 {offsets = [0, 64], sizes = [8, 64], strides = [1, 1]} : vector<8x256xf32> to vector<8x64xf32>
    %270 = vector.extract_strided_slice %267 {offsets = [0, 128], sizes = [8, 64], strides = [1, 1]} : vector<8x256xf32> to vector<8x64xf32>
    %271 = vector.extract_strided_slice %263 {offsets = [0, 192], sizes = [8, 64], strides = [1, 1]} : vector<8x256xf32> to vector<8x64xf32>
    %272 = arith.mulf %269, %257 : vector<8x64xf32>
    %273 = arith.mulf %268, %271 : vector<8x64xf32>
    %274 = arith.addf %272, %273 : vector<8x64xf32>
    %275 = math.tanh %274 : vector<8x64xf32>
    %276 = arith.mulf %270, %275 : vector<8x64xf32>
    %277 = vector.extract_strided_slice %154 {offsets = [56, 0], sizes = [8, 256], strides = [1, 1]} : vector<64x256xf32> to vector<8x256xf32>
    %cst_63 = arith.constant dense<0.000000e+00> : vector<8x256xf32>
    %278 = tpu.matmul %276, %155, %cst_63 {dimension_numbers = #tpu.dot_dimension_numbers<[1], [0], [0], [1], [0, 0, 1, 1], [], []>} : vector<8x64xf32>, vector<64x256xf32>, vector<8x256xf32> -> vector<8x256xf32>
    %279 = arith.addf %277, %278 : vector<8x256xf32>
    %280 = math.tanh %279 : vector<8x256xf32>
    %cst_64 = arith.constant 5.000000e-01 : f32
    %281 = vector.broadcast %cst_64 : f32 to vector<8x256xf32>
    %282 = arith.mulf %280, %281 : vector<8x256xf32>
    %cst_65 = arith.constant 5.000000e-01 : f32
    %283 = vector.broadcast %cst_65 : f32 to vector<8x256xf32>
    %284 = arith.addf %282, %283 : vector<8x256xf32>
    %285 = vector.extract_strided_slice %284 {offsets = [0, 0], sizes = [8, 64], strides = [1, 1]} : vector<8x256xf32> to vector<8x64xf32>
    %286 = vector.extract_strided_slice %284 {offsets = [0, 64], sizes = [8, 64], strides = [1, 1]} : vector<8x256xf32> to vector<8x64xf32>
    %287 = vector.extract_strided_slice %284 {offsets = [0, 128], sizes = [8, 64], strides = [1, 1]} : vector<8x256xf32> to vector<8x64xf32>
    %288 = vector.extract_strided_slice %280 {offsets = [0, 192], sizes = [8, 64], strides = [1, 1]} : vector<8x256xf32> to vector<8x64xf32>
    %289 = arith.mulf %286, %274 : vector<8x64xf32>
    %290 = arith.mulf %285, %288 : vector<8x64xf32>
    %291 = arith.addf %289, %290 : vector<8x64xf32>
    %292 = math.tanh %291 : vector<8x64xf32>
    %293 = arith.mulf %287, %292 : vector<8x64xf32>
    %294 = tpu.concatenate %174, %191, %208, %225, %242, %259, %276, %293 in 0 : vector<8x64xf32>, vector<8x64xf32>, vector<8x64xf32>, vector<8x64xf32>, vector<8x64xf32>, vector<8x64xf32>, vector<8x64xf32>, vector<8x64xf32> -> vector<64x64xf32>
    %295 = tpu.concatenate %293, %276, %259, %242, %225, %208, %191, %174 in 0 : vector<8x64xf32>, vector<8x64xf32>, vector<8x64xf32>, vector<8x64xf32>, vector<8x64xf32>, vector<8x64xf32>, vector<8x64xf32>, vector<8x64xf32> -> vector<64x64xf32>
    %c0_66 = arith.constant 0 : index
    %c0_67 = arith.constant 0 : index
    %296 = vector.load %arg3[%c0_66, %c0_67] : memref<129x128xf32, #tpu.memory_space<vmem>>, vector<64x128xf32>
    %cst_68 = arith.constant dense<0.000000e+00> : vector<64x128xf32>
    %297 = tpu.matmul %294, %296, %cst_68 {dimension_numbers = #tpu.dot_dimension_numbers<[1], [0], [0], [1], [0, 0, 1, 1], [], []>} : vector<64x64xf32>, vector<64x128xf32>, vector<64x128xf32> -> vector<64x128xf32>
    %c64_69 = arith.constant 64 : index
    %c0_70 = arith.constant 0 : index
    %298 = vector.load %arg3[%c64_69, %c0_70] : memref<129x128xf32, #tpu.memory_space<vmem>>, vector<64x128xf32>
    %cst_71 = arith.constant dense<0.000000e+00> : vector<64x128xf32>
    %299 = tpu.matmul %295, %298, %cst_71 {dimension_numbers = #tpu.dot_dimension_numbers<[1], [0], [0], [1], [0, 0, 1, 1], [], []>} : vector<64x64xf32>, vector<64x128xf32>, vector<64x128xf32> -> vector<64x128xf32>
    %300 = arith.addf %297, %299 : vector<64x128xf32>
    %c128_72 = arith.constant 128 : index
    %c0_73 = arith.constant 0 : index
    %301 = vector.load %arg3[%c128_72, %c0_73] : memref<129x128xf32, #tpu.memory_space<vmem>>, vector<1x128xf32>
    %302 = vector.broadcast %301 : vector<1x128xf32> to vector<64x128xf32>
    %303 = arith.addf %300, %302 : vector<64x128xf32>
    %c0_74 = arith.constant 0 : index
    %c0_75 = arith.constant 0 : index
    %304 = vector.load %arg4[%c0_74, %c0_75] : memref<64x128xf32, #tpu.memory_space<vmem>>, vector<64x128xf32>
    tpu.vector_store %arg4[%c0_74, %c0_75], %303 {strides = array<i32>} : memref<64x128xf32, #tpu.memory_space<vmem>>, vector<64x128xf32>,
    return
  }
}

</mosaic_0001>

<bundles_post_ra>
// kernel: tpu_custom_call.1
= control target key start
LH: loop header
LB: loop body
LE: loop exit
PB: predicated region body
PF: predicated region fallthrough
CT: control target
= control target key end

     0   :  { %9 = vsyncpa [#allocation3], 0  ;;  %s2754_s0 = inlined_call_operand.hbm [shape: f32[64,64], index: 0, kind: input, shape index: {}]   ;;  %s2755_s1 = inlined_call_operand.hbm [shape: f32[129,256], index: 1, kind: input, shape index: {}]   ;;  %s2756_s2 = inlined_call_operand.hbm [shape: f32[193,256], index: 2, kind: input, shape index: {}]   ;;  %s2757_s3 = inlined_call_operand.hbm [shape: f32[129,128], index: 3, kind: input, shape index: {}]   ;;  %s2758_s4 = inlined_call_operand.hbm [shape: f32[64,128], index: 4, kind: output, shape index: {}]  }
   0x1   :  { %10 = vsyncpa [#allocation6], 0 }
   0x2   :  { %11 = vsyncpa [#allocation9], 0  ;;  %s30_s17 = sshll.u32 %s2755_s1, 4  ;;  %s31_s17 = int_to_ptr.hbm [resolvable:$true] %s30_s17 }
   0x3   :  { %12 = vsyncpa [#allocation4], 0  ;;  %s2042_s18 = smov [#allocation5]   ;;  %s17_s22 = sshll.u32 %s2754_s0, 4  ;;  %s18_s22 = int_to_ptr.hbm [resolvable:$true] %s17_s22 }
   0x4   :  { %s32_s19 = sshll.u32 %s2042_s18, 4  ;;  %s2043_s23 = smov 256   ;;  %s33_s19 = int_to_ptr.vmem [resolvable:$true] %s32_s19 }
   0x5   :  { %s2044_s24 = smov 16   ;;  %s2045_s25 = smov [#allocation2]  }
   0x6   :  { %38 = dma.hbm_to_vmem [thread:$0]  %s31_s17, 4352, %s33_s19, [#allocation6], %s2043_s23, %s2043_s23, %s2044_s24  }
   0x7   :  { %s19_s26 = sshll.u32 %s2045_s25, 4  ;;  %s2046_s27 = smov 128   ;;  %s20_s26 = int_to_ptr.vmem [resolvable:$true] %s19_s26 }
   0x8   :  { %s2047_s28 = smov 8   ;;  %s43_s30 = sshll.u32 %s2756_s2, 4  ;;  %s44_s30 = int_to_ptr.hbm [resolvable:$true] %s43_s30 }
   0x9   :  { %25 = dma.hbm_to_vmem [thread:$0]  %s18_s22, 1024, %s20_s26, [#allocation3], %s2046_s27, %s2046_s27, %s2047_s28  }
   0xa   :  { %s2048_s5 = smov [#allocation7]   ;;  %s56_s8 = sshll.u32 %s2757_s3, 4  ;;  %s57_s8 = int_to_ptr.hbm [resolvable:$true] %s56_s8 }
   0xb   :  { %s45_s0 = sshll.u32 %s2048_s5, 4  ;;  %s2049_s9 = smov [#allocation8]   ;;  %s46_s0 = int_to_ptr.vmem [resolvable:$true] %s45_s0 }
   0xc   :  { %51 = dma.hbm_to_vmem [thread:$0]  %s44_s30, 6400, %s46_s0, [#allocation6], %s2043_s23, %s2043_s23, %s2044_s24  }
   0xd   :  { %s58_s10 = sshll.u32 %s2049_s9, 4  ;;  %s59_s10 = int_to_ptr.vmem [resolvable:$true] %s58_s10 }
   0xe   :  { %64 = dma.hbm_to_vmem [thread:$0]  %s57_s8, 2176, %s59_s10, [#allocation9], %s2046_s27, %s2046_s27, %s2047_s28  }
   0xf   :  { %2034 = dma.done.wait [#allocation3], 1024  }
  0x10   :  { %2035 = vsyncadd [#allocation3], 4294966272 }
  0x11   :  { %2036 = dma.done.wait [#allocation6], 10752  }
  0x12   :  { %2037 = vsyncadd [#allocation6], 4294956544 }
  0x13   :  { %2038 = dma.done.wait [#allocation9], 2176  }
  0x14   :  { %2039 = vsyncadd [#allocation9], 4294965120  ;;  %v104_v0 = vld [vmem:[#allocation5 + $0x78] sm:$0xff]  ;;  %v102_v1 = vld [vmem:[#allocation5 + $0x68] sm:$0xff]  ;;  %vm112_vm0 = vcmask 523264   ;;  %v2050_v34 = vmov 0.0  }
  0x15   :  { %1798 = vmatpush.msra.mxu3 %v104_v0  ;;  %186 = vmatpush.msra.mxu1 %v104_v0  ;;  %v100_v2 = vld [vmem:[#allocation5 + $0x58] sm:$0xff]  ;;  %v98_v3 = vld [vmem:[#allocation5 + $0x48] sm:$0xff]  ;;  %v85_v8 = vld [vmem:[#allocation2 + $0x20] sm:$0xff]  ;;  %s2051_s2 = smov 64   ;;  %s2052_s3 = smov [#allocation10]  }
  0x16   :  { %v96_v4 = vld [vmem:[#allocation5 + $0x38] sm:$0xff]  ;;  %v94_v5 = vld [vmem:[#allocation5 + $0x28] sm:$0xff]  ;;  %v81_v11 = vld [vmem:[#allocation2] sm:$0xff]  ;;  %s1681_s11 = sshll.u32 %s2052_s3, 4  ;;  %s1683_s14 = sshll.u32 %s2758_s4, 4  ;;  %s1682_s11 = int_to_ptr.vmem [resolvable:$true] %s1681_s11  ;;  %s1684_s14 = int_to_ptr.hbm [resolvable:$true] %s1683_s14 }
  0x17   :  { %1799 = vmatpush.msra.mxu3 %v102_v1  ;;  %187 = vmatpush.msra.mxu1 %v102_v1  ;;  %v92_v6 = vld [vmem:[#allocation5 + $0x18] sm:$0xff]  ;;  %v90_v7 = vld [vmem:[#allocation5 + $0x8] sm:$0xff]  ;;  %v103_v12 = vld [vmem:[#allocation5 + $0x70] sm:$0xff] }
  0x18   :  { %v2096_v9 = vld [vmem:[#allocation5 + $0xf8] sm:$0xff]  ;;  %v2099_v10 = vld [vmem:[#allocation5 + $0xe8] sm:$0xff]  ;;  %v101_v13 = vld [vmem:[#allocation5 + $0x60] sm:$0xff]  ;;  %1790 = vmatpush.msra.mxu2 %v103_v12  ;;  %145 = vmatpush.msra.mxu0 %v103_v12 }
  0x19   :  { %1800 = vmatpush.msra.mxu3 %v100_v2  ;;  %188 = vmatpush.msra.mxu1 %v100_v2  ;;  %v2104_v14 = vld [vmem:[#allocation5 + $0xd8] sm:$0xff]  ;;  %v99_v15 = vld [vmem:[#allocation5 + $0x50] sm:$0xff]  ;;  %v2108_v16 = vld [vmem:[#allocation5 + $0xc8] sm:$0xff] }
  0x1a   :  { %1791 = vmatpush.msra.mxu2 %v101_v13  ;;  %146 = vmatpush.msra.mxu0 %v101_v13  ;;  %v86_v17 = vld [vmem:[#allocation2 + $0x28] sm:$0xff]  ;;  %v97_v18 = vld [vmem:[#allocation5 + $0x40] sm:$0xff]  ;;  %v2112_v19 = vld [vmem:[#allocation5 + $0xb8] sm:$0xff] }
  0x1b   :  { %1801 = vmatpush.msra.mxu3 %v98_v3  ;;  %189 = vmatpush.msra.mxu1 %v98_v3  ;;  %v95_v20 = vld [vmem:[#allocation5 + $0x30] sm:$0xff]  ;;  %v2117_v21 = vld [vmem:[#allocation5 + $0xa8] sm:$0xff]  ;;  %v93_v22 = vld [vmem:[#allocation5 + $0x20] sm:$0xff] }
  0x1c   :  { %1792 = vmatpush.msra.mxu2 %v99_v15  ;;  %147 = vmatpush.msra.mxu0 %v99_v15  ;;  %v2120_v23 = vld [vmem:[#allocation5 + $0x98] sm:$0xff]  ;;  %v91_v24 = vld [vmem:[#allocation5 + $0x10] sm:$0xff]  ;;  %v2124_v25 = vld [vmem:[#allocation5 + $0x88] sm:$0xff] }
  0x1d   :  { %1802 = vmatpush.msra.mxu3 %v96_v4  ;;  %190 = vmatpush.msra.mxu1 %v96_v4  ;;  %v87_v26 = vld [vmem:[#allocation2 + $0x30] sm:$0xff]  ;;  %v89_v27 = vld [vmem:[#allocation5] sm:$0xff]  ;;  %v88_v31 = vld [vmem:[#allocation2 + $0x38] sm:$0xff] }
  0x1e   :  { %1793 = vmatpush.msra.mxu2 %v97_v18  ;;  %148 = vmatpush.msra.mxu0 %v97_v18  ;;  %v2130_v28 = vld [vmem:[#allocation5 + $0xf0] sm:$0xff]  ;;  %v2134_v29 = vld [vmem:[#allocation5 + $0xe0] sm:$0xff]  ;;  %v82_v3 = vld [vmem:[#allocation2 + $0x8] sm:$0xff] }
  0x1f   :  { %1803 = vmatpush.msra.mxu3 %v94_v5  ;;  %191 = vmatpush.msra.mxu1 %v94_v5  ;;  %v2138_v30 = vld [vmem:[#allocation5 + $0xd0] sm:$0xff]  ;;  %v2144_v32 = vld [vmem:[#allocation5 + $0xc0] sm:$0xff] }
  0x20   :  { %1794 = vmatpush.msra.mxu2 %v95_v20  ;;  %149 = vmatpush.msra.mxu0 %v95_v20  ;;  %v2150_v33 = vld [vmem:[#allocation5 + $0xb0] sm:$0xff]  ;;  %v2183_v35 = vld [vmem:[#allocation5 + $0xa0] sm:$0xff] }
  0x21   :  { %1804 = vmatpush.msra.mxu3 %v92_v6  ;;  %192 = vmatpush.msra.mxu1 %v92_v6  ;;  %v2185_v36 = vld [vmem:[#allocation5 + $0x90] sm:$0xff]  ;;  %v2191_v37 = vld [vmem:[#allocation5 + $0x80] sm:$0xff] }
  0x22   :  { %1795 = vmatpush.msra.mxu2 %v93_v22  ;;  %150 = vmatpush.msra.mxu0 %v93_v22  ;;  %v106_v41 = vld [vmem:[#allocation5 + $0x100] ss:$8 sm:$0x3] }
  0x23   :  { %1805 = vmatpush.msra.mxu3 %v90_v7  ;;  %193 = vmatpush.msra.mxu1 %v90_v7  ;;  %v2228_v44 = vperm.slane %v106_v41, 1  ;;  %v2240_v54 = vperm.slane %v106_v41, 0 }
  0x24   :  { %1710 = vmatmul.msk.f32.vlgmr.msra.gmra.mxu3 %vm112_vm0, %v85_v8  ;;  %1706 = vmatmul.msk.f32.vlgmr.msra.gmra.mxu1 %vm112_vm0, %v81_v11 }
  0x25   :  { %538 = vmatpush.msrb.mxu1 %v2096_v9  ;;  %266 = vmatpush.msrb.mxu3 %v2096_v9 }
  0x26   :  { %1796 = vmatpush.msra.mxu2 %v91_v24  ;;  %151 = vmatpush.msra.mxu0 %v91_v24 }
  0x27   :  { %267 = vmatpush.msrb.mxu3 %v2099_v10  ;;  %539 = vmatpush.msrb.mxu1 %v2099_v10 }
  0x28   :  { %1797 = vmatpush.msra.mxu2 %v89_v27  ;;  %152 = vmatpush.msra.mxu0 %v89_v27 }
  0x29   :  { %268 = vmatpush.msrb.mxu3 %v2104_v14  ;;  %540 = vmatpush.msrb.mxu1 %v2104_v14 }
  0x2a   :  { %1702 = vmatmul.msk.f32.vlgmr.msra.gmra.mxu2 %vm112_vm0, %v85_v8  ;;  %1698 = vmatmul.msk.f32.vlgmr.msra.gmra.mxu0 %vm112_vm0, %v81_v11 }
  0x2b   :  { %269 = vmatpush.msrb.mxu3 %v2108_v16  ;;  %541 = vmatpush.msrb.mxu1 %v2108_v16 }
  0x2c   :  { %1711 = vmatmul.msk.f32.gmra.mxu3 %vm112_vm0, %v86_v17  ;;  %246 = vmatpush.msrb.mxu2 %v2130_v28 }
  0x2d   :  { %270 = vmatpush.msrb.mxu3 %v2112_v19  ;;  %542 = vmatpush.msrb.mxu1 %v2112_v19 }
  0x2e   :  { %518 = vmatpush.msrb.mxu0 %v2130_v28  ;;  %247 = vmatpush.msrb.mxu2 %v2134_v29 }
  0x2f   :  { %271 = vmatpush.msrb.mxu3 %v2117_v21  ;;  %543 = vmatpush.msrb.mxu1 %v2117_v21 }
  0x30   :  { %519 = vmatpush.msrb.mxu0 %v2134_v29  ;;  %248 = vmatpush.msrb.mxu2 %v2138_v30 }
  0x31   :  { %272 = vmatpush.msrb.mxu3 %v2120_v23  ;;  %544 = vmatpush.msrb.mxu1 %v2120_v23 }
  0x32   :  { %520 = vmatpush.msrb.mxu0 %v2138_v30  ;;  %249 = vmatpush.msrb.mxu2 %v2144_v32 }
  0x33   :  { %273 = vmatpush.msrb.mxu3 %v2124_v25  ;;  %545 = vmatpush.msrb.mxu1 %v2124_v25 }
  0x34   :  { %1712 = vmatmul.msk.f32.gmra.mxu3 %vm112_vm0, %v87_v26  ;;  %1703 = vmatmul.msk.f32.gmra.mxu2 %vm112_vm0, %v86_v17 }
  0x35   :  { %334 = vmatpush.msra.mxu3 %v2096_v9  ;;  %674 = vmatpush.msra.mxu1 %v2096_v9 }
  0x36   :  { %250 = vmatpush.msrb.mxu2 %v2150_v33  ;;  %521 = vmatpush.msrb.mxu0 %v2144_v32 }
  0x37   :  { %335 = vmatpush.msra.mxu3 %v2099_v10  ;;  %675 = vmatpush.msra.mxu1 %v2099_v10 }
  0x38   :  { %522 = vmatpush.msrb.mxu0 %v2150_v33  ;;  %251 = vmatpush.msrb.mxu2 %v2183_v35 }
  0x39   :  { %336 = vmatpush.msra.mxu3 %v2104_v14  ;;  %676 = vmatpush.msra.mxu1 %v2104_v14 }
  0x3a   :  { %523 = vmatpush.msrb.mxu0 %v2183_v35  ;;  %252 = vmatpush.msrb.mxu2 %v2185_v36 }
  0x3b   :  { %337 = vmatpush.msra.mxu3 %v2108_v16  ;;  %677 = vmatpush.msra.mxu1 %v2108_v16 }
  0x3c   :  { %1713 = vmatmul.msk.f32.gmra.mxu3 %vm112_vm0, %v88_v31  ;;  %1704 = vmatmul.msk.f32.gmra.mxu2 %vm112_vm0, %v87_v26 }
  0x3d   :  { %338 = vmatpush.msra.mxu3 %v2112_v19  ;;  %678 = vmatpush.msra.mxu1 %v2112_v19 }
  0x3e   :  { %524 = vmatpush.msrb.mxu0 %v2185_v36  ;;  %253 = vmatpush.msrb.mxu2 %v2191_v37 }
  0x3f   :  { %339 = vmatpush.msra.mxu3 %v2117_v21  ;;  %679 = vmatpush.msra.mxu1 %v2117_v21 }
  0x40   :  { %525 = vmatpush.msrb.mxu0 %v2191_v37  ;;  %314 = vmatpush.msra.mxu2 %v2130_v28 }
  0x41   :  { %340 = vmatpush.msra.mxu3 %v2120_v23  ;;  %680 = vmatpush.msra.mxu1 %v2120_v23 }
  0x42   :  { %654 = vmatpush.msra.mxu0 %v2130_v28  ;;  %315 = vmatpush.msra.mxu2 %v2134_v29 }
  0x43   :  { %341 = vmatpush.msra.mxu3 %v2124_v25  ;;  %681 = vmatpush.msra.mxu1 %v2124_v25 }
  0x44   :  { %274 = vmatmul.f32.vlgmr.msrb.gmra.mxu3 %v2050_v34  ;;  %1705 = vmatmul.msk.f32.gmra.mxu2 %vm112_vm0, %v88_v31 }
  0x45   :  { %402 = vmatpush.msrb.mxu3 %v2096_v9  ;;  %655 = vmatpush.msra.mxu0 %v2134_v29 }
  0x46   :  { %316 = vmatpush.msra.mxu2 %v2138_v30  ;;  %1699 = vmatmul.msk.f32.gmra.mxu0 %vm112_vm0, %v82_v3 }
  0x47   :  { %403 = vmatpush.msrb.mxu3 %v2099_v10  ;;  %656 = vmatpush.msra.mxu0 %v2138_v30 }
  0x48   :  { %317 = vmatpush.msra.mxu2 %v2144_v32  ;;  %1707 = vmatmul.msk.f32.gmra.mxu1 %vm112_vm0, %v82_v3 }
  0x49   :  { %404 = vmatpush.msrb.mxu3 %v2104_v14  ;;  %657 = vmatpush.msra.mxu0 %v2144_v32 }
  0x4a   :  { %318 = vmatpush.msra.mxu2 %v2150_v33 }
  0x4b   :  { %405 = vmatpush.msrb.mxu3 %v2108_v16  ;;  %658 = vmatpush.msra.mxu0 %v2150_v33 }
  0x4c   :  { %254 = vmatmul.f32.vlgmr.msrb.gmra.mxu2 %v2050_v34 }
  0x4d   :  { %406 = vmatpush.msrb.mxu3 %v2112_v19  ;;  %659 = vmatpush.msra.mxu0 %v2183_v35 }
  0x4e   :  { %319 = vmatpush.msra.mxu2 %v2183_v35 }
  0x4f   :  { %407 = vmatpush.msrb.mxu3 %v2117_v21  ;;  %660 = vmatpush.msra.mxu0 %v2185_v36 }
  0x50   :  { %320 = vmatpush.msra.mxu2 %v2185_v36 }
  0x51   :  { %408 = vmatpush.msrb.mxu3 %v2120_v23  ;;  %661 = vmatpush.msra.mxu0 %v2191_v37 }
  0x52   :  { %321 = vmatpush.msra.mxu2 %v2191_v37 }
  0x53   :  { %409 = vmatpush.msrb.mxu3 %v2124_v25 }
  0x54   :  { %382 = vmatpush.msrb.mxu2 %v2130_v28 }
  0x56   :  { %383 = vmatpush.msrb.mxu2 %v2134_v29 }
  0x58   :  { %384 = vmatpush.msrb.mxu2 %v2138_v30 }
  0x5a   :  { %385 = vmatpush.msrb.mxu2 %v2144_v32 }
  0x5c   :  { %386 = vmatpush.msrb.mxu2 %v2150_v33 }
  0x5e   :  { %387 = vmatpush.msrb.mxu2 %v2183_v35 }
  0x60   :  { %388 = vmatpush.msrb.mxu2 %v2185_v36 }
  0x62   :  { %389 = vmatpush.msrb.mxu2 %v2191_v37 }
  0xa1   :  { %v195_v43 = vpop.f32.mrf.mxu1 }
  0xa2   :  { %v196_v45 = vadd.f32 %v195_v43, %v2228_v44 }
  0xa7   :  { %v2215_v38 = vpop.f32.mrf.mxu3  ;;  %v154_v53 = vpop.f32.mrf.mxu0 }
  0xa8   :  { %v155_v55 = vadd.f32 %v154_v53, %v2240_v54 }
  0xad   :  { %v2232_v49 = vpop.f32.mrf.mxu2 }
  0xaf   :  { %v2221_v39 = vpop.f32.mrf.mxu3 }
  0xb7   :  { %v2224_v40 = vpop.f32.mrf.mxu3  ;;  %v2234_v50 = vpop.f32.mrf.mxu2 }
  0xbf   :  { %v2226_v42 = vpop.f32.mrf.mxu3  ;;  %v2236_v51 = vpop.f32.mrf.mxu2 }
  0xc3   :  { %v157_v17 = vpop.f32.mrf.mxu0 }
  0xc4   :  { %v158_v18 = vadd.f32 %v157_v17, %v2240_v54  ;;  %v84_v17 = vld [vmem:[#allocation2 + $0x18] sm:$0xff] }
  0xc5   :  { %v198_v8 = vpop.f32.mrf.mxu1 }
  0xc6   :  { %v199_v11 = vadd.f32 %v198_v8, %v2228_v44 }
  0xc7   :  { %v275_v46 = vpop.f32.mrf.mxu3  ;;  %v2238_v52 = vpop.f32.mrf.mxu2 }
  0xc8   :  { %v279_v47 = vadd.f32 %v275_v46, %v196_v45 }
  0xca   :  { %1818 = vtanh.f32 %v279_v47 }
  0xcf   :  { %v255_v56 = vpop.f32.mrf.mxu2 }
  0xd0   :  { %v1819_v48 = vpop.eup %1818  ;;  %v278_v57 = vadd.f32 %v255_v56, %v155_v55 }
  0xd1   :  { %288 = vrot.lane.b32.xlu0 %v1819_v48, %s2051_s2  ;;  %v283_v4 = vmul.f32 0.5, %v1819_v48  ;;  %v83_v48 = vld [vmem:[#allocation2 + $0x10] sm:$0xff] }
  0xd2   :  { %1820 = vtanh.f32 %v278_v57  ;;  %1700 = vmatmul.msk.f32.gmra.mxu0 %vm112_vm0, %v83_v48  ;;  %1708 = vmatmul.msk.f32.gmra.mxu1 %vm112_vm0, %v83_v48 }
  0xd3   :  { %v285_v5 = vadd.f32 0.5, %v283_v4 }
  0xd8   :  { %v1821_v58 = vpop.eup %1820 }
  0xd9   :  { %v282_v59 = vmul.f32 0.5, %v1821_v58 }
  0xda   :  { %1701 = vmatmul.msk.f32.gmra.mxu0 %vm112_vm0, %v84_v17  ;;  %1709 = vmatmul.msk.f32.gmra.mxu1 %vm112_vm0, %v84_v17 }
  0xdb   :  { %v284_v60 = vadd.f32 0.5, %v282_v59 }
  0xdd   :  { %v286_v63 = vmul.f32 0.0, %v284_v60 }
 0x143   :  { %v289_v61 = vpop.permute.xlu0 %288 }
 0x144   :  { %v291_v62 = vmul.f32 %v289_v61, %v284_v60 }
 0x146   :  { %293 = vrot.lane.b32.xlu0 %v291_v62, %s2051_s2 }
 0x14f   :  { %v201_v58 = vpop.f32.mrf.mxu1 }
 0x150   :  { %v202_v59 = vadd.f32 %v201_v58, %v2228_v44 }
 0x1b8   :  { %v294_v0 = vpop.permute.xlu0 %293 }
 0x1b9   :  { %v296_v1 = vadd.f32 %v294_v0, %v286_v63  ;;  %v160_v63 = vpop.f32.mrf.mxu0 }
 0x1ba   :  { %v161_v0 = vadd.f32 %v160_v63, %v2240_v54 }
 0x1bb   :  { %1822 = vtanh.f32 %v296_v1 }
 0x1c1   :  { %v1823_v2 = vpop.eup %1822 }
 0x1c2   :  { %299 = vrot.lane.b32.xlu1 %v1823_v2, %s2051_s2 }
 0x234   :  { %v300_v6 = vpop.permute.xlu1 %299 }
 0x235   :  { %v2247_v7 = vmul.f32 %v300_v6, %v285_v5 }
 0x237   :  { %1714 = vmatmul.msk.f32.vlgmr.msra.gmra.mxu2 %vm112_vm0, %v2247_v7  ;;  %1715 = vmatmul.msk.f32.vlgmr.msra.gmra.mxu3 %vm112_vm0, %v2247_v7 }
 0x238   :  { %450 = vmatpush.msra.mxu2 %v2130_v28  ;;  %470 = vmatpush.msra.mxu3 %v2096_v9 }
 0x23a   :  { %451 = vmatpush.msra.mxu2 %v2134_v29  ;;  %471 = vmatpush.msra.mxu3 %v2099_v10 }
 0x23c   :  { %452 = vmatpush.msra.mxu2 %v2138_v30  ;;  %472 = vmatpush.msra.mxu3 %v2104_v14 }
 0x23e   :  { %453 = vmatpush.msra.mxu2 %v2144_v32  ;;  %473 = vmatpush.msra.mxu3 %v2108_v16 }
 0x240   :  { %454 = vmatpush.msra.mxu2 %v2150_v33  ;;  %474 = vmatpush.msra.mxu3 %v2112_v19 }
 0x242   :  { %455 = vmatpush.msra.mxu2 %v2183_v35  ;;  %475 = vmatpush.msra.mxu3 %v2117_v21 }
 0x244   :  { %456 = vmatpush.msra.mxu2 %v2185_v36  ;;  %476 = vmatpush.msra.mxu3 %v2120_v23 }
 0x246   :  { %457 = vmatpush.msra.mxu2 %v2191_v37  ;;  %477 = vmatpush.msra.mxu3 %v2124_v25 }
 0x2ba   :  { %v343_v12 = vpop.f32.mrf.mxu3  ;;  %v323_v20 = vpop.f32.mrf.mxu2 }
 0x2bb   :  { %v347_v13 = vadd.f32 %v343_v12, %v199_v11  ;;  %v346_v22 = vadd.f32 %v323_v20, %v158_v18 }
 0x2bd   :  { %1824 = vtanh.f32 %v347_v13 }
 0x2be   :  { %1826 = vtanh.f32 %v346_v22 }
 0x2c3   :  { %v1825_v15 = vpop.eup %1824 }
 0x2c4   :  { %356 = vrot.lane.b32.xlu1 %v1825_v15, %s2051_s2  ;;  %v1827_v24 = vpop.eup %1826  ;;  %v351_v53 = vmul.f32 0.5, %v1825_v15 }
 0x2c5   :  { %v350_v26 = vmul.f32 0.5, %v1827_v24 }
 0x2c6   :  { %v353_v55 = vadd.f32 0.5, %v351_v53 }
 0x2c7   :  { %v352_v27 = vadd.f32 0.5, %v350_v26 }
 0x2c9   :  { %v354_v43 = vmul.f32 %v352_v27, %v296_v1 }
 0x336   :  { %v357_v31 = vpop.permute.xlu1 %356 }
 0x337   :  { %v359_v41 = vmul.f32 %v357_v31, %v352_v27 }
 0x339   :  { %361 = vrot.lane.b32.xlu2 %v359_v41, %s2051_s2 }
 0x393   :  { %v362_v45 = vpop.permute.xlu2 %361 }
 0x394   :  { %v364_v46 = vadd.f32 %v362_v45, %v354_v43 }
 0x396   :  { %1828 = vtanh.f32 %v364_v46 }
 0x39c   :  { %v1829_v47 = vpop.eup %1828 }
 0x39d   :  { %367 = vrot.lane.b32.xlu2 %v1829_v47, %s2051_s2 }
 0x3f7   :  { %v368_v56 = vpop.permute.xlu2 %367 }
 0x3f8   :  { %v2276_v57 = vmul.f32 %v368_v56, %v353_v55  ;;  %v167_v56 = vadd.f32 %v2232_v49, %v2240_v54 }
 0x3fa   :  { %1716 = vmatmul.msk.f32.vlgmr.msrb.gmra.mxu2 %vm112_vm0, %v2276_v57  ;;  %1717 = vmatmul.msk.f32.vlgmr.msrb.gmra.mxu3 %vm112_vm0, %v2276_v57 }
 0x3fb   :  { %586 = vmatpush.msrb.mxu2 %v2130_v28  ;;  %606 = vmatpush.msrb.mxu3 %v2096_v9 }
 0x3fd   :  { %587 = vmatpush.msrb.mxu2 %v2134_v29  ;;  %607 = vmatpush.msrb.mxu3 %v2099_v10 }
 0x3ff   :  { %588 = vmatpush.msrb.mxu2 %v2138_v30  ;;  %608 = vmatpush.msrb.mxu3 %v2104_v14 }
 0x401   :  { %589 = vmatpush.msrb.mxu2 %v2144_v32  ;;  %609 = vmatpush.msrb.mxu3 %v2108_v16 }
 0x403   :  { %590 = vmatpush.msrb.mxu2 %v2150_v33  ;;  %610 = vmatpush.msrb.mxu3 %v2112_v19 }
 0x405   :  { %591 = vmatpush.msrb.mxu2 %v2183_v35  ;;  %611 = vmatpush.msrb.mxu3 %v2117_v21 }
 0x407   :  { %592 = vmatpush.msrb.mxu2 %v2185_v36  ;;  %612 = vmatpush.msrb.mxu3 %v2120_v23 }
 0x409   :  { %593 = vmatpush.msrb.mxu2 %v2191_v37  ;;  %613 = vmatpush.msrb.mxu3 %v2124_v25 }
 0x47d   :  { %v411_v60 = vpop.f32.mrf.mxu3  ;;  %v391_v1 = vpop.f32.mrf.mxu2 }
 0x47e   :  { %v415_v61 = vadd.f32 %v411_v60, %v202_v59  ;;  %v414_v2 = vadd.f32 %v391_v1, %v161_v0 }
 0x480   :  { %1830 = vtanh.f32 %v415_v61 }
 0x481   :  { %1832 = vtanh.f32 %v414_v2 }
 0x486   :  { %v1831_v62 = vpop.eup %1830 }
 0x487   :  { %424 = vrot.lane.b32.xlu0 %v1831_v62, %s2051_s2  ;;  %v1833_v3 = vpop.eup %1832  ;;  %v419_v18 = vmul.f32 0.5, %v1831_v62 }
 0x488   :  { %v418_v4 = vmul.f32 0.5, %v1833_v3 }
 0x489   :  { %v421_v20 = vadd.f32 0.5, %v419_v18 }
 0x48a   :  { %v420_v5 = vadd.f32 0.5, %v418_v4 }
 0x48c   :  { %v422_v11 = vmul.f32 %v420_v5, %v364_v46  ;;  %v208_v46 = vadd.f32 %v2215_v38, %v2228_v44 }
 0x4f9   :  { %v425_v6 = vpop.permute.xlu0 %424 }
 0x4fa   :  { %v427_v8 = vmul.f32 %v425_v6, %v420_v5  ;;  %v211_v6 = vadd.f32 %v2221_v39, %v2228_v44 }
 0x4fc   :  { %429 = vrot.lane.b32.xlu1 %v427_v8, %s2051_s2 }
 0x56e   :  { %v430_v12 = vpop.permute.xlu1 %429 }
 0x56f   :  { %v432_v13 = vadd.f32 %v430_v12, %v422_v11 }
 0x571   :  { %1834 = vtanh.f32 %v432_v13 }
 0x577   :  { %v1835_v15 = vpop.eup %1834 }
 0x578   :  { %435 = vrot.lane.b32.xlu2 %v1835_v15, %s2051_s2  ;;  %v170_v15 = vadd.f32 %v2234_v50, %v2240_v54 }
 0x5d2   :  { %v436_v22 = vpop.permute.xlu2 %435 }
 0x5d3   :  { %v2305_v24 = vmul.f32 %v436_v22, %v421_v20 }
 0x5d5   :  { %1718 = vmatmul.msk.f32.vlgmr.msra.gmra.mxu2 %vm112_vm0, %v2305_v24  ;;  %1719 = vmatmul.msk.f32.vlgmr.msra.gmra.mxu3 %vm112_vm0, %v2305_v24 }
 0x5d6   :  { %722 = vmatpush.msra.mxu2 %v2130_v28  ;;  %742 = vmatpush.msra.mxu3 %v2096_v9  ;;  %v204_v9 = vpop.f32.mrf.mxu1 }
 0x5d8   :  { %723 = vmatpush.msra.mxu2 %v2134_v29  ;;  %743 = vmatpush.msra.mxu3 %v2099_v10  ;;  %v205_v10 = vadd.f32 %v204_v9, %v2228_v44 }
 0x5da   :  { %724 = vmatpush.msra.mxu2 %v2138_v30  ;;  %744 = vmatpush.msra.mxu3 %v2104_v14 }
 0x5dc   :  { %725 = vmatpush.msra.mxu2 %v2144_v32  ;;  %745 = vmatpush.msra.mxu3 %v2108_v16 }
 0x5de   :  { %726 = vmatpush.msra.mxu2 %v2150_v33  ;;  %746 = vmatpush.msra.mxu3 %v2112_v19  ;;  %v163_v19 = vpop.f32.mrf.mxu0 }
 0x5e0   :  { %727 = vmatpush.msra.mxu2 %v2183_v35  ;;  %747 = vmatpush.msra.mxu3 %v2117_v21  ;;  %v164_v21 = vadd.f32 %v163_v19, %v2240_v54 }
 0x5e2   :  { %728 = vmatpush.msra.mxu2 %v2185_v36  ;;  %748 = vmatpush.msra.mxu3 %v2120_v23 }
 0x5e4   :  { %729 = vmatpush.msra.mxu2 %v2191_v37  ;;  %749 = vmatpush.msra.mxu3 %v2124_v25 }
 0x658   :  { %v479_v14 = vpop.f32.mrf.mxu3  ;;  %v459_v29 = vpop.f32.mrf.mxu2 }
 0x659   :  { %v483_v16 = vadd.f32 %v479_v14, %v205_v10  ;;  %v482_v30 = vadd.f32 %v459_v29, %v164_v21 }
 0x65b   :  { %1836 = vtanh.f32 %v483_v16 }
 0x65c   :  { %1838 = vtanh.f32 %v482_v30  ;;  %v214_v30 = vadd.f32 %v2224_v40, %v2228_v44  ;;  %v793_v40 = vld [vmem:[#allocation7 + $0x70] sm:$0xff] }
 0x661   :  { %v1837_v28 = vpop.eup %1836 }
 0x662   :  { %492 = vrot.lane.b32.xlu0 %v1837_v28, %s2051_s2  ;;  %v1839_v23 = vpop.eup %1838  ;;  %v487_v31 = vmul.f32 0.5, %v1837_v28 }
 0x663   :  { %v486_v32 = vmul.f32 0.5, %v1839_v23 }
 0x664   :  { %v489_v41 = vadd.f32 0.5, %v487_v31 }
 0x665   :  { %v488_v33 = vadd.f32 0.5, %v486_v32 }
 0x667   :  { %v490_v36 = vmul.f32 %v488_v33, %v432_v13 }
 0x6d4   :  { %v493_v35 = vpop.permute.xlu0 %492 }
 0x6d5   :  { %v495_v25 = vmul.f32 %v493_v35, %v488_v33 }
 0x6d7   :  { %497 = vrot.lane.b32.xlu1 %v495_v25, %s2051_s2  ;;  %v173_v25 = vadd.f32 %v2236_v51, %v2240_v54 }
 0x749   :  { %v498_v37 = vpop.permute.xlu1 %497 }
 0x74a   :  { %v500_v26 = vadd.f32 %v498_v37, %v490_v36 }
 0x74c   :  { %1840 = vtanh.f32 %v500_v26 }
 0x752   :  { %v1841_v27 = vpop.eup %1840 }
 0x753   :  { %503 = vrot.lane.b32.xlu2 %v1841_v27, %s2051_s2 }
 0x7ad   :  { %v504_v43 = vpop.permute.xlu2 %503 }
 0x7ae   :  { %v2332_v45 = vmul.f32 %v504_v43, %v489_v41  ;;  %v794_v43 = vld [vmem:[#allocation7 + $0x78] sm:$0xff] }
 0x7b0   :  { %1720 = vmatmul.msk.f32.vlgmr.msrb.gmra.mxu0 %vm112_vm0, %v2332_v45  ;;  %1721 = vmatmul.msk.f32.vlgmr.msrb.gmra.mxu1 %vm112_vm0, %v2332_v45 }
 0x82d   :  { %v547_v47 = vpop.f32.mrf.mxu1  ;;  %v527_v55 = vpop.f32.mrf.mxu0 }
 0x82e   :  { %v551_v48 = vadd.f32 %v547_v47, %v208_v46  ;;  %v550_v58 = vadd.f32 %v527_v55, %v167_v56  ;;  %v791_v46 = vld [vmem:[#allocation7 + $0x60] sm:$0xff]  ;;  %v792_v47 = vld [vmem:[#allocation7 + $0x68] sm:$0xff] }
 0x830   :  { %1842 = vtanh.f32 %v551_v48  ;;  %v789_v48 = vld [vmem:[#allocation7 + $0x50] sm:$0xff] }
 0x831   :  { %1844 = vtanh.f32 %v550_v58 }
 0x836   :  { %v1843_v53 = vpop.eup %1842 }
 0x837   :  { %560 = vrot.lane.b32.xlu0 %v1843_v53, %s2051_s2  ;;  %v1845_v59 = vpop.eup %1844  ;;  %v555_v3 = vmul.f32 0.5, %v1843_v53  ;;  %v790_v53 = vld [vmem:[#allocation7 + $0x58] sm:$0xff] }
 0x838   :  { %v554_v60 = vmul.f32 0.5, %v1845_v59  ;;  %v787_v59 = vld [vmem:[#allocation7 + $0x40] sm:$0xff] }
 0x839   :  { %v557_v4 = vadd.f32 0.5, %v555_v3  ;;  %v780_v3 = vld [vmem:[#allocation7 + $0x8] sm:$0xff] }
 0x83a   :  { %v556_v61 = vadd.f32 0.5, %v554_v60  ;;  %v788_v60 = vld [vmem:[#allocation7 + $0x48] sm:$0xff] }
 0x83c   :  { %v558_v38 = vmul.f32 %v556_v61, %v500_v26 }
 0x8a9   :  { %v561_v62 = vpop.permute.xlu0 %560 }
 0x8aa   :  { %v563_v63 = vmul.f32 %v561_v62, %v556_v61  ;;  %v785_v61 = vld [vmem:[#allocation7 + $0x30] sm:$0xff]  ;;  %v786_v62 = vld [vmem:[#allocation7 + $0x38] sm:$0xff] }
 0x8ac   :  { %565 = vrot.lane.b32.xlu1 %v563_v63, %s2051_s2  ;;  %v783_v63 = vld [vmem:[#allocation7 + $0x20] sm:$0xff] }
 0x91e   :  { %v566_v0 = vpop.permute.xlu1 %565 }
 0x91f   :  { %v568_v1 = vadd.f32 %v566_v0, %v558_v38  ;;  %v784_v38 = vld [vmem:[#allocation7 + $0x28] sm:$0xff]  ;;  %v781_v0 = vld [vmem:[#allocation7 + $0x10] sm:$0xff] }
 0x921   :  { %1846 = vtanh.f32 %v568_v1 }
 0x927   :  { %v1847_v2 = vpop.eup %1846 }
 0x928   :  { %571 = vrot.lane.b32.xlu2 %v1847_v2, %s2051_s2  ;;  %v779_v2 = vld [vmem:[#allocation7] sm:$0xff] }
 0x982   :  { %v572_v5 = vpop.permute.xlu2 %571 }
 0x983   :  { %v2345_v49 = vmul.f32 %v572_v5, %v557_v4 }
 0x985   :  { %1722 = vmatmul.msk.f32.vlgmr.msrb.gmra.mxu2 %vm112_vm0, %v2345_v49  ;;  %1723 = vmatmul.msk.f32.vlgmr.msrb.gmra.mxu3 %vm112_vm0, %v2345_v49 }
 0x986   :  { %904 = vmatpush.msrb.mxu2 %v793_v40  ;;  %945 = vmatpush.msrb.mxu3 %v794_v43  ;;  %v2420_v40 = vld [vmem:[#allocation7 + $0x168] sm:$0xff]  ;;  %v2424_v43 = vld [vmem:[#allocation7 + $0x158] sm:$0xff] }
 0x988   :  { %905 = vmatpush.msrb.mxu2 %v791_v46  ;;  %946 = vmatpush.msrb.mxu3 %v792_v47  ;;  %v2428_v47 = vld [vmem:[#allocation7 + $0x148] sm:$0xff] }
 0x98a   :  { %906 = vmatpush.msrb.mxu2 %v789_v48  ;;  %947 = vmatpush.msrb.mxu3 %v790_v53 }
 0x98c   :  { %907 = vmatpush.msrb.mxu2 %v787_v59  ;;  %948 = vmatpush.msrb.mxu3 %v788_v60  ;;  %v2454_v59 = vld [vmem:[#allocation7 + $0x170] sm:$0xff]  ;;  %v2456_v60 = vld [vmem:[#allocation7 + $0x160] sm:$0xff] }
 0x98e   :  { %908 = vmatpush.msrb.mxu2 %v785_v61  ;;  %949 = vmatpush.msrb.mxu3 %v786_v62  ;;  %v2460_v61 = vld [vmem:[#allocation7 + $0x150] sm:$0xff]  ;;  %v2465_v62 = vld [vmem:[#allocation7 + $0x140] sm:$0xff] }
 0x990   :  { %909 = vmatpush.msrb.mxu2 %v783_v63  ;;  %950 = vmatpush.msrb.mxu3 %v784_v38  ;;  %v2477_v63 = vld [vmem:[#allocation7 + $0x130] sm:$0xff]  ;;  %v2479_v38 = vld [vmem:[#allocation7 + $0x120] sm:$0xff] }
 0x992   :  { %910 = vmatpush.msrb.mxu2 %v781_v0  ;;  %v2483_v0 = vld [vmem:[#allocation7 + $0x110] sm:$0xff] }
 0x994   :  { %911 = vmatpush.msrb.mxu2 %v779_v2  ;;  %v979_v2 = vld [vmem:[#allocation7 + $0x180] ss:$8 sm:$0x3] }
 0xa08   :  { %v615_v8 = vpop.f32.mrf.mxu3  ;;  %v595_v13 = vpop.f32.mrf.mxu2 }
 0xa09   :  { %v619_v11 = vadd.f32 %v615_v8, %v211_v6  ;;  %v618_v17 = vadd.f32 %v595_v13, %v170_v15 }
 0xa0b   :  { %1848 = vtanh.f32 %v619_v11  ;;  %v217_v11 = vadd.f32 %v2226_v42, %v2228_v44  ;;  %v809_v42 = vld [vmem:[#allocation7 + $0xf0] sm:$0xff]  ;;  %v810_v44 = vld [vmem:[#allocation7 + $0xf8] sm:$0xff] }
 0xa0c   :  { %1850 = vtanh.f32 %v618_v17  ;;  %822 = vmatpush.msrb.mxu0 %v809_v42  ;;  %863 = vmatpush.msrb.mxu1 %v810_v44 }
 0xa11   :  { %v1849_v12 = vpop.eup %1848 }
 0xa12   :  { %628 = vrot.lane.b32.xlu0 %v1849_v12, %s2051_s2  ;;  %v1851_v18 = vpop.eup %1850  ;;  %v623_v19 = vmul.f32 0.5, %v1849_v12 }
 0xa13   :  { %v622_v20 = vmul.f32 0.5, %v1851_v18  ;;  %v176_v18 = vadd.f32 %v2238_v52, %v2240_v54  ;;  %v803_v52 = vld [vmem:[#allocation7 + $0xc0] sm:$0xff]  ;;  %v804_v54 = vld [vmem:[#allocation7 + $0xc8] sm:$0xff] }
 0xa14   :  { %v625_v21 = vadd.f32 0.5, %v623_v19  ;;  %v805_v19 = vld [vmem:[#allocation7 + $0xd0] sm:$0xff] }
 0xa15   :  { %v624_v22 = vadd.f32 0.5, %v622_v20 }
 0xa17   :  { %v626_v39 = vmul.f32 %v624_v22, %v568_v1  ;;  %v782_v1 = vld [vmem:[#allocation7 + $0x18] sm:$0xff] }
 0xa18   :  { %951 = vmatpush.msrb.mxu3 %v782_v1 }
 0xa1a   :  { %952 = vmatpush.msrb.mxu3 %v780_v3 }
 0xa84   :  { %v629_v9 = vpop.permute.xlu0 %628 }
 0xa85   :  { %v631_v10 = vmul.f32 %v629_v9, %v624_v22 }
 0xa87   :  { %633 = vrot.lane.b32.xlu1 %v631_v10, %s2051_s2 }
 0xaf9   :  { %v634_v14 = vpop.permute.xlu1 %633 }
 0xafa   :  { %v636_v16 = vadd.f32 %v634_v14, %v626_v39 }
 0xafc   :  { %1852 = vtanh.f32 %v636_v16 }
 0xb02   :  { %v1853_v28 = vpop.eup %1852 }
 0xb03   :  { %639 = vrot.lane.b32.xlu2 %v1853_v28, %s2051_s2  ;;  %v808_v28 = vld [vmem:[#allocation7 + $0xe8] sm:$0xff] }
 0xb04   :  { %864 = vmatpush.msrb.mxu1 %v808_v28 }
 0xb5d   :  { %v640_v29 = vpop.permute.xlu2 %639 }
 0xb5e   :  { %v2358_v50 = vmul.f32 %v640_v29, %v625_v21  ;;  %v806_v21 = vld [vmem:[#allocation7 + $0xd8] sm:$0xff]  ;;  %v801_v29 = vld [vmem:[#allocation7 + $0xb0] sm:$0xff] }
 0xb5f   :  { %865 = vmatpush.msrb.mxu1 %v806_v21 }
 0xb60   :  { %1724 = vmatmul.msk.f32.vlgmr.msra.gmra.mxu0 %vm112_vm0, %v2358_v50  ;;  %1725 = vmatmul.msk.f32.vlgmr.msra.gmra.mxu1 %vm112_vm0, %v2358_v50 }
 0xb61   :  { %866 = vmatpush.msrb.mxu1 %v804_v54 }
 0xbdd   :  { %v683_v23 = vpop.f32.mrf.mxu1  ;;  %v663_v35 = vpop.f32.mrf.mxu0 }
 0xbde   :  { %v687_v32 = vadd.f32 %v683_v23, %v214_v30  ;;  %v686_v36 = vadd.f32 %v663_v35, %v173_v25  ;;  %v802_v30 = vld [vmem:[#allocation7 + $0xb8] sm:$0xff]  ;;  %v799_v23 = vld [vmem:[#allocation7 + $0xa0] sm:$0xff] }
 0xbdf   :  { %867 = vmatpush.msrb.mxu1 %v802_v30  ;;  %v798_v35 = vld [vmem:[#allocation7 + $0x98] sm:$0xff] }
 0xbe0   :  { %1854 = vtanh.f32 %v687_v32  ;;  %v800_v32 = vld [vmem:[#allocation7 + $0xa8] sm:$0xff] }
 0xbe1   :  { %1856 = vtanh.f32 %v686_v36  ;;  %868 = vmatpush.msrb.mxu1 %v800_v32 }
 0xbe3   :  { %869 = vmatpush.msrb.mxu1 %v798_v35 }
 0xbe6   :  { %v1855_v33 = vpop.eup %1854 }
 0xbe7   :  { %696 = vrot.lane.b32.xlu0 %v1855_v33, %s2051_s2  ;;  %v1857_v37 = vpop.eup %1856  ;;  %v691_v4 = vmul.f32 0.5, %v1855_v33  ;;  %v797_v33 = vld [vmem:[#allocation7 + $0x90] sm:$0xff] }
 0xbe8   :  { %v690_v26 = vmul.f32 0.5, %v1857_v37 }
 0xbe9   :  { %v693_v5 = vadd.f32 0.5, %v691_v4 }
 0xbea   :  { %v692_v27 = vadd.f32 0.5, %v690_v26 }
 0xbec   :  { %v694_v51 = vmul.f32 %v692_v27, %v636_v16  ;;  %v807_v16 = vld [vmem:[#allocation7 + $0xe0] sm:$0xff] }
 0xbed   :  { %823 = vmatpush.msrb.mxu0 %v807_v16 }
 0xbef   :  { %824 = vmatpush.msrb.mxu0 %v805_v19 }
 0xbf1   :  { %825 = vmatpush.msrb.mxu0 %v803_v52 }
 0xbf3   :  { %826 = vmatpush.msrb.mxu0 %v801_v29 }
 0xbf5   :  { %827 = vmatpush.msrb.mxu0 %v799_v23 }
 0xbf7   :  { %828 = vmatpush.msrb.mxu0 %v797_v33 }
 0xc59   :  { %v697_v31 = vpop.permute.xlu0 %696 }
 0xc5a   :  { %v699_v41 = vmul.f32 %v697_v31, %v692_v27  ;;  %v795_v27 = vld [vmem:[#allocation7 + $0x80] sm:$0xff]  ;;  %v796_v31 = vld [vmem:[#allocation7 + $0x88] sm:$0xff] }
 0xc5b   :  { %829 = vmatpush.msrb.mxu0 %v795_v27  ;;  %870 = vmatpush.msrb.mxu1 %v796_v31 }
 0xc5c   :  { %701 = vrot.lane.b32.xlu1 %v699_v41, %s2051_s2  ;;  %v2416_v41 = vld [vmem:[#allocation7 + $0x178] sm:$0xff] }
 0xc5d   :  { %1045 = vmatpush.msra.mxu1 %v2416_v41  ;;  %1025 = vmatpush.msra.mxu0 %v2454_v59 }
 0xc5f   :  { %1046 = vmatpush.msra.mxu1 %v2420_v40  ;;  %1026 = vmatpush.msra.mxu0 %v2456_v60 }
 0xc61   :  { %1047 = vmatpush.msra.mxu1 %v2424_v43  ;;  %1027 = vmatpush.msra.mxu0 %v2460_v61 }
 0xc63   :  { %1048 = vmatpush.msra.mxu1 %v2428_v47  ;;  %1028 = vmatpush.msra.mxu0 %v2465_v62 }
 0xc65   :  { %1029 = vmatpush.msra.mxu0 %v2477_v63 }
 0xc67   :  { %1030 = vmatpush.msra.mxu0 %v2479_v38 }
 0xc69   :  { %1031 = vmatpush.msra.mxu0 %v2483_v0 }
 0xcce   :  { %v702_v55 = vpop.permute.xlu1 %701 }
 0xccf   :  { %v2370_v56 = vadd.f32 %v702_v55, %v694_v51  ;;  %v2434_v55 = vld [vmem:[#allocation7 + $0x138] sm:$0xff] }
 0xcd0   :  { %1049 = vmatpush.msra.mxu1 %v2434_v55 }
 0xcd1   :  { %1858 = vtanh.f32 %v2370_v56 }
 0xcd7   :  { %v1859_v58 = vpop.eup %1858 }
 0xcd8   :  { %707 = vrot.lane.b32.xlu2 %v1859_v58, %s2051_s2  ;;  %v2452_v58 = vld [vmem:[#allocation7 + $0x118] sm:$0xff] }
 0xd32   :  { %v708_v6 = vpop.permute.xlu2 %707 }
 0xd33   :  { %v2374_v8 = vmul.f32 %v708_v6, %v693_v5 }
 0xd35   :  { %1726 = vmatmul.msk.f32.vlgmr.msra.gmra.mxu2 %vm112_vm0, %v2374_v8  ;;  %1727 = vmatmul.msk.f32.vlgmr.msra.gmra.mxu3 %vm112_vm0, %v2374_v8 }
 0xd36   :  { %1113 = vmatpush.msra.mxu3 %v2416_v41  ;;  %1093 = vmatpush.msra.mxu2 %v2454_v59 }
 0xd38   :  { %1114 = vmatpush.msra.mxu3 %v2420_v40  ;;  %1094 = vmatpush.msra.mxu2 %v2456_v60 }
 0xd3a   :  { %1115 = vmatpush.msra.mxu3 %v2424_v43  ;;  %1095 = vmatpush.msra.mxu2 %v2460_v61 }
 0xd3c   :  { %1116 = vmatpush.msra.mxu3 %v2428_v47  ;;  %1096 = vmatpush.msra.mxu2 %v2465_v62 }
 0xd3d   :  { %1744 = vmatmul.msk.f32.vlgmr.msrb.gmra.mxu2 %vm112_vm0, %v2247_v7  ;;  %1752 = vmatmul.msk.f32.vlgmr.msrb.gmra.mxu3 %vm112_vm0, %v2247_v7 }
 0xd3e   :  { %1117 = vmatpush.msra.mxu3 %v2434_v55  ;;  %1097 = vmatpush.msra.mxu2 %v2477_v63 }
 0xd40   :  { %1098 = vmatpush.msra.mxu2 %v2479_v38 }
 0xd42   :  { %1099 = vmatpush.msra.mxu2 %v2483_v0 }
 0xd45   :  { %1745 = vmatmul.msk.f32.gmra.mxu2 %vm112_vm0, %v2276_v57  ;;  %1753 = vmatmul.msk.f32.gmra.mxu3 %vm112_vm0, %v2276_v57 }
 0xd4d   :  { %1746 = vmatmul.msk.f32.gmra.mxu2 %vm112_vm0, %v2305_v24  ;;  %1754 = vmatmul.msk.f32.gmra.mxu3 %vm112_vm0, %v2305_v24 }
 0xd55   :  { %1747 = vmatmul.msk.f32.gmra.mxu2 %vm112_vm0, %v2332_v45  ;;  %1755 = vmatmul.msk.f32.gmra.mxu3 %vm112_vm0, %v2332_v45 }
 0xd5d   :  { %1748 = vmatmul.msk.f32.gmra.mxu2 %vm112_vm0, %v2345_v49  ;;  %1756 = vmatmul.msk.f32.gmra.mxu3 %vm112_vm0, %v2345_v49 }
 0xd65   :  { %1749 = vmatmul.msk.f32.gmra.mxu2 %vm112_vm0, %v2358_v50  ;;  %1757 = vmatmul.msk.f32.gmra.mxu3 %vm112_vm0, %v2358_v50 }
 0xd6d   :  { %1750 = vmatmul.msk.f32.gmra.mxu2 %vm112_vm0, %v2374_v8  ;;  %1758 = vmatmul.msk.f32.gmra.mxu3 %vm112_vm0, %v2374_v8 }
 0xdb8   :  { %v751_v12 = vpop.f32.mrf.mxu3  ;;  %v731_v17 = vpop.f32.mrf.mxu2 }
 0xdb9   :  { %v755_v13 = vadd.f32 %v751_v12, %v217_v11  ;;  %v754_v20 = vadd.f32 %v731_v17, %v176_v18  ;;  %v981_v12 = vperm.slane %v979_v2, 0 }
 0xdbb   :  { %1860 = vtanh.f32 %v755_v13  ;;  %v982_v13 = vperm.slane %v979_v2, 1 }
 0xdbc   :  { %1862 = vtanh.f32 %v754_v20 }
 0xdc1   :  { %v1861_v15 = vpop.eup %1860 }
 0xdc2   :  { %764 = vrot.lane.b32.xlu0 %v1861_v15, %s2051_s2  ;;  %v1863_v22 = vpop.eup %1862  ;;  %v759_v46 = vmul.f32 0.5, %v1861_v15 }
 0xdc3   :  { %v758_v9 = vmul.f32 0.5, %v1863_v22 }
 0xdc4   :  { %v761_v48 = vadd.f32 0.5, %v759_v46 }
 0xdc5   :  { %v760_v10 = vadd.f32 0.5, %v758_v9 }
 0xdc7   :  { %v762_v25 = vmul.f32 %v760_v10, %v2370_v56  ;;  %v2444_v56 = vld [vmem:[#allocation7 + $0x128] sm:$0xff] }
 0xdc8   :  { %1050 = vmatpush.msra.mxu1 %v2444_v56  ;;  %1118 = vmatpush.msra.mxu3 %v2444_v56 }
 0xdca   :  { %1051 = vmatpush.msra.mxu1 %v2452_v58  ;;  %1119 = vmatpush.msra.mxu3 %v2452_v58 }
 0xe34   :  { %v765_v39 = vpop.permute.xlu0 %764 }
 0xe35   :  { %v767_v14 = vmul.f32 %v765_v39, %v760_v10 }
 0xe37   :  { %769 = vrot.lane.b32.xlu1 %v767_v14, %s2051_s2 }
 0xea9   :  { %v770_v36 = vpop.permute.xlu1 %769 }
 0xeaa   :  { %v772_v37 = vadd.f32 %v770_v36, %v762_v25 }
 0xeac   :  { %1864 = vtanh.f32 %v772_v37 }
 0xeb2   :  { %v1865_v26 = vpop.eup %1864 }
 0xeb3   :  { %775 = vrot.lane.b32.xlu2 %v1865_v26, %s2051_s2 }
 0xf0d   :  { %v776_v53 = vpop.permute.xlu2 %775 }
 0xf0e   :  { %v778_v51 = vmul.f32 %v776_v53, %v761_v48 }
 0xf10   :  { %1728 = vmatmul.msk.f32.vlgmr.msrb.gmra.mxu0 %vm112_vm0, %v778_v51  ;;  %1736 = vmatmul.msk.f32.vlgmr.msrb.gmra.mxu1 %vm112_vm0, %v778_v51 }
 0xf11   :  { %1751 = vmatmul.msk.f32.gmra.mxu2 %vm112_vm0, %v778_v51  ;;  %1759 = vmatmul.msk.f32.gmra.mxu3 %vm112_vm0, %v778_v51 }
 0xf18   :  { %1729 = vmatmul.msk.f32.gmra.mxu0 %vm112_vm0, %v2374_v8  ;;  %1737 = vmatmul.msk.f32.gmra.mxu1 %vm112_vm0, %v2374_v8 }
 0xf20   :  { %1730 = vmatmul.msk.f32.gmra.mxu0 %vm112_vm0, %v2358_v50  ;;  %1738 = vmatmul.msk.f32.gmra.mxu1 %vm112_vm0, %v2358_v50  ;;  %v2475_v50 = vld [vmem:[#allocation7 + $0x108] sm:$0xff] }
 0xf21   :  { %1052 = vmatpush.msra.mxu1 %v2475_v50  ;;  %1120 = vmatpush.msra.mxu3 %v2475_v50 }
 0xf23   :  { %1181 = vmatpush.msrb.mxu1 %v2416_v41  ;;  %1249 = vmatpush.msrb.mxu3 %v2416_v41 }
 0xf25   :  { %1182 = vmatpush.msrb.mxu1 %v2420_v40  ;;  %1250 = vmatpush.msrb.mxu3 %v2420_v40 }
 0xf27   :  { %1183 = vmatpush.msrb.mxu1 %v2424_v43  ;;  %1251 = vmatpush.msrb.mxu3 %v2424_v43 }
 0xf28   :  { %1731 = vmatmul.msk.f32.gmra.mxu0 %vm112_vm0, %v2345_v49  ;;  %1739 = vmatmul.msk.f32.gmra.mxu1 %vm112_vm0, %v2345_v49  ;;  %v2489_v49 = vld [vmem:[#allocation7 + $0x100] sm:$0xff] }
 0xf29   :  { %1032 = vmatpush.msra.mxu0 %v2489_v49  ;;  %1184 = vmatpush.msrb.mxu1 %v2428_v47 }
 0xf2a   :  { %1100 = vmatpush.msra.mxu2 %v2489_v49  ;;  %1252 = vmatpush.msrb.mxu3 %v2428_v47 }
 0xf2b   :  { %1161 = vmatpush.msrb.mxu0 %v2454_v59  ;;  %1185 = vmatpush.msrb.mxu1 %v2434_v55 }
 0xf2c   :  { %1229 = vmatpush.msrb.mxu2 %v2454_v59  ;;  %1253 = vmatpush.msrb.mxu3 %v2434_v55 }
 0xf2d   :  { %1162 = vmatpush.msrb.mxu0 %v2456_v60  ;;  %1186 = vmatpush.msrb.mxu1 %v2444_v56 }
 0xf2e   :  { %1230 = vmatpush.msrb.mxu2 %v2456_v60  ;;  %1254 = vmatpush.msrb.mxu3 %v2444_v56 }
 0xf2f   :  { %1163 = vmatpush.msrb.mxu0 %v2460_v61  ;;  %1187 = vmatpush.msrb.mxu1 %v2452_v58 }
 0xf30   :  { %1732 = vmatmul.msk.f32.gmra.mxu0 %vm112_vm0, %v2332_v45  ;;  %1740 = vmatmul.msk.f32.gmra.mxu1 %vm112_vm0, %v2332_v45 }
 0xf31   :  { %1164 = vmatpush.msrb.mxu0 %v2465_v62  ;;  %1231 = vmatpush.msrb.mxu2 %v2460_v61 }
 0xf32   :  { %1188 = vmatpush.msrb.mxu1 %v2475_v50  ;;  %1255 = vmatpush.msrb.mxu3 %v2452_v58 }
 0xf33   :  { %1165 = vmatpush.msrb.mxu0 %v2477_v63  ;;  %1232 = vmatpush.msrb.mxu2 %v2465_v62 }
 0xf34   :  { %1256 = vmatpush.msrb.mxu3 %v2475_v50 }
 0xf35   :  { %1166 = vmatpush.msrb.mxu0 %v2479_v38  ;;  %1233 = vmatpush.msrb.mxu2 %v2477_v63 }
 0xf37   :  { %1167 = vmatpush.msrb.mxu0 %v2483_v0  ;;  %1234 = vmatpush.msrb.mxu2 %v2479_v38 }
 0xf38   :  { %1733 = vmatmul.msk.f32.gmra.mxu0 %vm112_vm0, %v2305_v24  ;;  %1741 = vmatmul.msk.f32.gmra.mxu1 %vm112_vm0, %v2305_v24 }
 0xf39   :  { %1168 = vmatpush.msrb.mxu0 %v2489_v49  ;;  %1235 = vmatpush.msrb.mxu2 %v2483_v0 }
 0xf3b   :  { %1236 = vmatpush.msrb.mxu2 %v2489_v49 }
 0xf40   :  { %1734 = vmatmul.msk.f32.gmra.mxu0 %vm112_vm0, %v2276_v57  ;;  %1742 = vmatmul.msk.f32.gmra.mxu1 %vm112_vm0, %v2276_v57 }
 0xf48   :  { %1735 = vmatmul.msk.f32.gmra.mxu0 %vm112_vm0, %v2247_v7  ;;  %1743 = vmatmul.msk.f32.gmra.mxu1 %vm112_vm0, %v2247_v7  ;;  %v954_v7 = vpop.f32.mrf.mxu3 }
 0xf50   :  { %1033 = vmatmul.f32.vlgmr.msra.gmra.mxu0 %v2050_v34  ;;  %1053 = vmatmul.f32.vlgmr.msra.gmra.mxu1 %v2050_v34  ;;  %v2562_v34 = vpop.f32.mrf.mxu2  ;;  %v957_v24 = vpop.f32.mrf.mxu3 }
 0xf51   :  { %1297 = vmatpush.msra.mxu0 %v2454_v59  ;;  %1317 = vmatpush.msra.mxu1 %v2416_v41 }
 0xf53   :  { %1298 = vmatpush.msra.mxu0 %v2456_v60  ;;  %1318 = vmatpush.msra.mxu1 %v2420_v40 }
 0xf55   :  { %1299 = vmatpush.msra.mxu0 %v2460_v61  ;;  %1319 = vmatpush.msra.mxu1 %v2424_v43 }
 0xf57   :  { %1300 = vmatpush.msra.mxu0 %v2465_v62  ;;  %1320 = vmatpush.msra.mxu1 %v2428_v47 }
 0xf58   :  { %v916_v57 = vpop.f32.mrf.mxu2  ;;  %v960_v4 = vpop.f32.mrf.mxu3 }
 0xf59   :  { %1301 = vmatpush.msra.mxu0 %v2477_v63  ;;  %1321 = vmatpush.msra.mxu1 %v2434_v55 }
 0xf5b   :  { %1302 = vmatpush.msra.mxu0 %v2479_v38  ;;  %1322 = vmatpush.msra.mxu1 %v2444_v56 }
 0xf5d   :  { %1303 = vmatpush.msra.mxu0 %v2483_v0  ;;  %1323 = vmatpush.msra.mxu1 %v2452_v58 }
 0xf5f   :  { %1304 = vmatpush.msra.mxu0 %v2489_v49  ;;  %1324 = vmatpush.msra.mxu1 %v2475_v50 }
 0xf60   :  { %v919_v3 = vpop.f32.mrf.mxu2  ;;  %v963_v9 = vpop.f32.mrf.mxu3 }
 0xf68   :  { %v922_v22 = vpop.f32.mrf.mxu2  ;;  %v966_v52 = vpop.f32.mrf.mxu3 }
 0xf70   :  { %v925_v21 = vpop.f32.mrf.mxu2  ;;  %v969_v37 = vpop.f32.mrf.mxu3 }
 0xf78   :  { %v928_v36 = vpop.f32.mrf.mxu2 }
 0xf80   :  { %v931_v51 = vpop.f32.mrf.mxu2 }
 0xf8d   :  { %v2564_v45 = vpop.f32.mrf.mxu0  ;;  %v872_v1 = vpop.f32.mrf.mxu1 }
 0xf95   :  { %v834_v5 = vpop.f32.mrf.mxu0  ;;  %v875_v6 = vpop.f32.mrf.mxu1 }
 0xf96   :  { %v917_v8 = vadd.f32 %v916_v57, %v834_v5  ;;  %v958_v11 = vadd.f32 %v957_v24, %v875_v6  ;;  %v972_v57 = vpop.f32.mrf.mxu3 }
 0xf98   :  { %v2566_v15 = vadd.f32 %v981_v12, %v917_v8  ;;  %v2568_v17 = vadd.f32 %v982_v13, %v958_v11  ;;  %v934_v8 = vpop.f32.mrf.mxu2 }
 0xf9d   :  { %v837_v18 = vpop.f32.mrf.mxu0  ;;  %v878_v20 = vpop.f32.mrf.mxu1 }
 0xf9e   :  { %v920_v10 = vadd.f32 %v919_v3, %v837_v18  ;;  %v961_v39 = vadd.f32 %v960_v4, %v878_v20  ;;  %v975_v11 = vpop.f32.mrf.mxu3 }
 0xfa0   :  { %v2570_v14 = vadd.f32 %v981_v12, %v920_v10  ;;  %v2572_v42 = vadd.f32 %v982_v13, %v961_v39  ;;  %v955_v10 = vadd.f32 %v954_v7, %v872_v1 }
 0xfa5   :  { %v840_v44 = vpop.f32.mrf.mxu0  ;;  %v881_v16 = vpop.f32.mrf.mxu1 }
 0xfa6   :  { %v923_v28 = vadd.f32 %v922_v22, %v840_v44  ;;  %v964_v19 = vadd.f32 %v963_v9, %v881_v16  ;;  %v986_v16 = vadd.f32 %v982_v13, %v955_v10 }
 0xfa8   :  { %v2574_v54 = vadd.f32 %v981_v12, %v923_v28  ;;  %v2576_v29 = vadd.f32 %v982_v13, %v964_v19 }
 0xfad   :  { %v843_v30 = vpop.f32.mrf.mxu0  ;;  %v884_v23 = vpop.f32.mrf.mxu1 }
 0xfae   :  { %v926_v32 = vadd.f32 %v925_v21, %v843_v30  ;;  %v967_v33 = vadd.f32 %v966_v52, %v884_v23  ;;  %v914_v52 = vadd.f32 %v2562_v34, %v2564_v45 }
 0xfb0   :  { %v2578_v35 = vadd.f32 %v981_v12, %v926_v32  ;;  %v2580_v25 = vadd.f32 %v982_v13, %v967_v33  ;;  %v985_v23 = vadd.f32 %v981_v12, %v914_v52 }
 0xfb5   :  { %v846_v26 = vpop.f32.mrf.mxu0  ;;  %v887_v27 = vpop.f32.mrf.mxu1 }
 0xfb6   :  { %v929_v31 = vadd.f32 %v928_v36, %v846_v26  ;;  %v970_v46 = vadd.f32 %v969_v37, %v887_v27 }
 0xfb8   :  { %v2582_v48 = vadd.f32 %v981_v12, %v929_v31  ;;  %v2584_v53 = vadd.f32 %v982_v13, %v970_v46 }
 0xfbd   :  { %v849_v24 = vpop.f32.mrf.mxu0  ;;  %v890_v2 = vpop.f32.mrf.mxu1 }
 0xfbe   :  { %v932_v3 = vadd.f32 %v931_v51, %v849_v24  ;;  %v973_v4 = vadd.f32 %v972_v57, %v890_v2 }
 0xfc0   :  { %v2586_v5 = vadd.f32 %v981_v12, %v932_v3  ;;  %v2588_v6 = vadd.f32 %v982_v13, %v973_v4 }
 0xfc5   :  { %v852_v18 = vpop.f32.mrf.mxu0  ;;  %v893_v20 = vpop.f32.mrf.mxu1 }
 0xfc6   :  { %v935_v22 = vadd.f32 %v934_v8, %v852_v18  ;;  %v976_v9 = vadd.f32 %v975_v11, %v893_v20 }
 0xfc8   :  { %v2590_v39 = vadd.f32 %v981_v12, %v935_v22  ;;  %v2592_v44 = vadd.f32 %v982_v13, %v976_v9 }
 0xfcd   :  { %v1054_v28 = vpop.f32.mrf.mxu1  ;;  %v1034_v30 = vpop.f32.mrf.mxu0 }
 0xfce   :  { %v1058_v19 = vadd.f32 %v1054_v28, %v986_v16  ;;  %v1057_v32 = vadd.f32 %v1034_v30, %v985_v23 }
 0xfd0   :  { %1866 = vtanh.f32 %v1058_v19 }
 0xfd1   :  { %1868 = vtanh.f32 %v1057_v32 }
 0xfd6   :  { %v1867_v21 = vpop.eup %1866 }
 0xfd7   :  { %1067 = vrot.lane.b32.xlu0 %v1867_v21, %s2051_s2  ;;  %v1869_v33 = vpop.eup %1868  ;;  %v1062_v46 = vmul.f32 0.5, %v1867_v21 }
 0xfd8   :  { %v1061_v7 = vmul.f32 0.5, %v1869_v33 }
 0xfd9   :  { %v1064_v34 = vadd.f32 0.5, %v1062_v46 }
 0xfda   :  { %v1063_v1 = vadd.f32 0.5, %v1061_v7 }
 0xfdc   :  { %v1065_v13 = vmul.f32 0.0, %v1063_v1 }
0x1049   :  { %v1068_v36 = vpop.permute.xlu0 %1067 }
0x104a   :  { %v1070_v37 = vmul.f32 %v1068_v36, %v1063_v1 }
0x104c   :  { %1072 = vrot.lane.b32.xlu1 %v1070_v37, %s2051_s2 }
0x10be   :  { %v1073_v26 = vpop.permute.xlu1 %1072 }
0x10bf   :  { %v1075_v27 = vadd.f32 %v1073_v26, %v1065_v13 }
0x10c1   :  { %1870 = vtanh.f32 %v1075_v27 }
0x10c7   :  { %v1871_v31 = vpop.eup %1870 }
0x10c8   :  { %1078 = vrot.lane.b32.xlu2 %v1871_v31, %s2051_s2 }
0x1122   :  { %v1079_v45 = vpop.permute.xlu2 %1078 }
0x1123   :  { %v2599_v12 = vmul.f32 %v1079_v45, %v1064_v34 }
0x1125   :  { %1760 = vmatmul.msk.f32.vlgmr.msra.gmra.mxu2 %vm112_vm0, %v2599_v12  ;;  %1761 = vmatmul.msk.f32.vlgmr.msra.gmra.mxu3 %vm112_vm0, %v2599_v12 }
0x1126   :  { %1365 = vmatpush.msra.mxu2 %v2454_v59  ;;  %1385 = vmatpush.msra.mxu3 %v2416_v41 }
0x1128   :  { %1366 = vmatpush.msra.mxu2 %v2456_v60  ;;  %1386 = vmatpush.msra.mxu3 %v2420_v40 }
0x112a   :  { %1367 = vmatpush.msra.mxu2 %v2460_v61  ;;  %1387 = vmatpush.msra.mxu3 %v2424_v43 }
0x112c   :  { %1368 = vmatpush.msra.mxu2 %v2465_v62  ;;  %1388 = vmatpush.msra.mxu3 %v2428_v47 }
0x112e   :  { %1369 = vmatpush.msra.mxu2 %v2477_v63  ;;  %1389 = vmatpush.msra.mxu3 %v2434_v55 }
0x1130   :  { %1370 = vmatpush.msra.mxu2 %v2479_v38  ;;  %1390 = vmatpush.msra.mxu3 %v2444_v56 }
0x1132   :  { %1371 = vmatpush.msra.mxu2 %v2483_v0  ;;  %1391 = vmatpush.msra.mxu3 %v2452_v58 }
0x1134   :  { %1372 = vmatpush.msra.mxu2 %v2489_v49  ;;  %1392 = vmatpush.msra.mxu3 %v2475_v50 }
0x11a8   :  { %v1122_v51 = vpop.f32.mrf.mxu3  ;;  %v1102_v2 = vpop.f32.mrf.mxu2 }
0x11a9   :  { %v1126_v57 = vadd.f32 %v1122_v51, %v2568_v17  ;;  %v1125_v3 = vadd.f32 %v1102_v2, %v2566_v15 }
0x11ab   :  { %1872 = vtanh.f32 %v1126_v57 }
0x11ac   :  { %1874 = vtanh.f32 %v1125_v3 }
0x11b1   :  { %v1873_v24 = vpop.eup %1872 }
0x11b2   :  { %1135 = vrot.lane.b32.xlu0 %v1873_v24, %s2051_s2  ;;  %v1875_v4 = vpop.eup %1874  ;;  %v1130_v16 = vmul.f32 0.5, %v1873_v24 }
0x11b3   :  { %v1129_v8 = vmul.f32 0.5, %v1875_v4 }
0x11b4   :  { %v1132_v28 = vadd.f32 0.5, %v1130_v16 }
0x11b5   :  { %v1131_v11 = vadd.f32 0.5, %v1129_v8 }
0x11b7   :  { %v1133_v22 = vmul.f32 %v1131_v11, %v1075_v27 }
0x1224   :  { %v1136_v18 = vpop.permute.xlu0 %1135 }
0x1225   :  { %v1138_v20 = vmul.f32 %v1136_v18, %v1131_v11 }
0x1227   :  { %1140 = vrot.lane.b32.xlu1 %v1138_v20, %s2051_s2 }
0x1299   :  { %v1141_v9 = vpop.permute.xlu1 %1140 }
0x129a   :  { %v1143_v10 = vadd.f32 %v1141_v9, %v1133_v22 }
0x129c   :  { %1876 = vtanh.f32 %v1143_v10 }
0x12a2   :  { %v1877_v17 = vpop.eup %1876 }
0x12a3   :  { %1146 = vrot.lane.b32.xlu2 %v1877_v17, %s2051_s2 }
0x12fd   :  { %v1147_v19 = vpop.permute.xlu2 %1146 }
0x12fe   :  { %v2626_v21 = vmul.f32 %v1147_v19, %v1132_v28 }
0x1300   :  { %1762 = vmatmul.msk.f32.vlgmr.msrb.gmra.mxu0 %vm112_vm0, %v2626_v21  ;;  %1763 = vmatmul.msk.f32.vlgmr.msrb.gmra.mxu1 %vm112_vm0, %v2626_v21 }
0x1301   :  { %1453 = vmatpush.msrb.mxu1 %v2416_v41  ;;  %1433 = vmatpush.msrb.mxu0 %v2454_v59 }
0x1303   :  { %1454 = vmatpush.msrb.mxu1 %v2420_v40  ;;  %1434 = vmatpush.msrb.mxu0 %v2456_v60 }
0x1305   :  { %1455 = vmatpush.msrb.mxu1 %v2424_v43  ;;  %1435 = vmatpush.msrb.mxu0 %v2460_v61 }
0x1307   :  { %1456 = vmatpush.msrb.mxu1 %v2428_v47  ;;  %1436 = vmatpush.msrb.mxu0 %v2465_v62 }
0x1309   :  { %1457 = vmatpush.msrb.mxu1 %v2434_v55  ;;  %1437 = vmatpush.msrb.mxu0 %v2477_v63 }
0x130b   :  { %1458 = vmatpush.msrb.mxu1 %v2444_v56  ;;  %1438 = vmatpush.msrb.mxu0 %v2479_v38 }
0x130d   :  { %1459 = vmatpush.msrb.mxu1 %v2452_v58  ;;  %1439 = vmatpush.msrb.mxu0 %v2483_v0 }
0x130f   :  { %1460 = vmatpush.msrb.mxu1 %v2475_v50  ;;  %1440 = vmatpush.msrb.mxu0 %v2489_v49 }
0x137d   :  { %v1190_v15 = vpop.f32.mrf.mxu1  ;;  %v1170_v23 = vpop.f32.mrf.mxu0 }
0x137e   :  { %v1194_v52 = vadd.f32 %v1190_v15, %v2572_v42  ;;  %v1193_v32 = vadd.f32 %v1170_v23, %v2570_v14 }
0x1380   :  { %1878 = vtanh.f32 %v1194_v52 }
0x1381   :  { %1880 = vtanh.f32 %v1193_v32 }
0x1386   :  { %v1879_v30 = vpop.eup %1878 }
0x1387   :  { %1203 = vrot.lane.b32.xlu0 %v1879_v30, %s2051_s2  ;;  %v1881_v33 = vpop.eup %1880  ;;  %v1198_v31 = vmul.f32 0.5, %v1879_v30 }
0x1388   :  { %v1197_v7 = vmul.f32 0.5, %v1881_v33 }
0x1389   :  { %v1200_v46 = vadd.f32 0.5, %v1198_v31  ;;  %v1561_v31 = vld [vmem:[#allocation8 + $0x18] sm:$0xff] }
0x138a   :  { %v1199_v1 = vadd.f32 0.5, %v1197_v7 }
0x138c   :  { %v1201_v13 = vmul.f32 %v1199_v1, %v1143_v10 }
0x13f9   :  { %v1204_v36 = vpop.permute.xlu0 %1203 }
0x13fa   :  { %v1206_v37 = vmul.f32 %v1204_v36, %v1199_v1  ;;  %v1565_v36 = vld [vmem:[#allocation8 + $0x38] sm:$0xff] }
0x13fc   :  { %1208 = vrot.lane.b32.xlu1 %v1206_v37, %s2051_s2  ;;  %v1564_v37 = vld [vmem:[#allocation8 + $0x30] sm:$0xff] }
0x146e   :  { %v1209_v26 = vpop.permute.xlu1 %1208 }
0x146f   :  { %v1211_v27 = vadd.f32 %v1209_v26, %v1201_v13  ;;  %v1563_v13 = vld [vmem:[#allocation8 + $0x28] sm:$0xff] }
0x1471   :  { %1882 = vtanh.f32 %v1211_v27 }
0x1477   :  { %v1883_v42 = vpop.eup %1882 }
0x1478   :  { %1214 = vrot.lane.b32.xlu2 %v1883_v42, %s2051_s2 }
0x14d2   :  { %v1215_v34 = vpop.permute.xlu2 %1214 }
0x14d3   :  { %v2653_v45 = vmul.f32 %v1215_v34, %v1200_v46  ;;  %v1560_v46 = vld [vmem:[#allocation8 + $0x10] sm:$0xff]  ;;  %v1559_v34 = vld [vmem:[#allocation8 + $0x8] sm:$0xff] }
0x14d5   :  { %1764 = vmatmul.msk.f32.vlgmr.msrb.gmra.mxu2 %vm112_vm0, %v2653_v45  ;;  %1765 = vmatmul.msk.f32.vlgmr.msrb.gmra.mxu3 %vm112_vm0, %v2653_v45 }
0x14d6   :  { %1501 = vmatpush.msrb.mxu2 %v2454_v59  ;;  %1521 = vmatpush.msrb.mxu3 %v2416_v41 }
0x14d8   :  { %1502 = vmatpush.msrb.mxu2 %v2456_v60  ;;  %1522 = vmatpush.msrb.mxu3 %v2420_v40 }
0x14da   :  { %1503 = vmatpush.msrb.mxu2 %v2460_v61  ;;  %1523 = vmatpush.msrb.mxu3 %v2424_v43 }
0x14dc   :  { %1504 = vmatpush.msrb.mxu2 %v2465_v62  ;;  %1524 = vmatpush.msrb.mxu3 %v2428_v47 }
0x14de   :  { %1505 = vmatpush.msrb.mxu2 %v2477_v63  ;;  %1525 = vmatpush.msrb.mxu3 %v2434_v55 }
0x14e0   :  { %1506 = vmatpush.msrb.mxu2 %v2479_v38  ;;  %1526 = vmatpush.msrb.mxu3 %v2444_v56 }
0x14e2   :  { %1507 = vmatpush.msrb.mxu2 %v2483_v0  ;;  %1527 = vmatpush.msrb.mxu3 %v2452_v58 }
0x14e4   :  { %1508 = vmatpush.msrb.mxu2 %v2489_v49  ;;  %1528 = vmatpush.msrb.mxu3 %v2475_v50 }
0x1558   :  { %v1258_v41 = vpop.f32.mrf.mxu3  ;;  %v1238_v47 = vpop.f32.mrf.mxu2 }
0x1559   :  { %v1262_v40 = vadd.f32 %v1258_v41, %v2576_v29  ;;  %v1261_v55 = vadd.f32 %v1238_v47, %v2574_v54  ;;  %v1558_v41 = vld [vmem:[#allocation8] sm:$0xff] }
0x155b   :  { %1884 = vtanh.f32 %v1262_v40 }
0x155c   :  { %1886 = vtanh.f32 %v1261_v55 }
0x1561   :  { %v1885_v43 = vpop.eup %1884 }
0x1562   :  { %1271 = vrot.lane.b32.xlu0 %v1885_v43, %s2051_s2  ;;  %v1887_v56 = vpop.eup %1886  ;;  %v1266_v0 = vmul.f32 0.5, %v1885_v43 }
0x1563   :  { %v1265_v59 = vmul.f32 0.5, %v1887_v56 }
0x1564   :  { %v1268_v49 = vadd.f32 0.5, %v1266_v0 }
0x1565   :  { %v1267_v60 = vadd.f32 0.5, %v1265_v59 }
0x1567   :  { %v1269_v62 = vmul.f32 %v1267_v60, %v1211_v27 }
0x15d4   :  { %v1272_v61 = vpop.permute.xlu0 %1271 }
0x15d5   :  { %v1274_v58 = vmul.f32 %v1272_v61, %v1267_v60 }
0x15d7   :  { %1276 = vrot.lane.b32.xlu1 %v1274_v58, %s2051_s2 }
0x1649   :  { %v1277_v50 = vpop.permute.xlu1 %1276 }
0x164a   :  { %v1279_v63 = vadd.f32 %v1277_v50, %v1269_v62 }
0x164c   :  { %1888 = vtanh.f32 %v1279_v63 }
0x1652   :  { %v1889_v38 = vpop.eup %1888 }
0x1653   :  { %1282 = vrot.lane.b32.xlu2 %v1889_v38, %s2051_s2 }
0x16ad   :  { %v1283_v14 = vpop.permute.xlu2 %1282 }
0x16ae   :  { %v2680_v29 = vmul.f32 %v1283_v14, %v1268_v49 }
0x16b0   :  { %1766 = vmatmul.msk.f32.vlgmr.msra.gmra.mxu0 %vm112_vm0, %v2680_v29  ;;  %1767 = vmatmul.msk.f32.vlgmr.msra.gmra.mxu1 %vm112_vm0, %v2680_v29 }
0x16b1   :  { %1626 = vmatpush.msra.mxu1 %v1565_v36 }
0x16b3   :  { %1627 = vmatpush.msra.mxu1 %v1564_v37 }
0x16b5   :  { %1628 = vmatpush.msra.mxu1 %v1563_v13  ;;  %v1817_v13 = vld [vmem:[#allocation8 + $0x80] ss:$0 sm:$0xff] }
0x172d   :  { %v1326_v54 = vpop.f32.mrf.mxu1  ;;  %v1306_v24 = vpop.f32.mrf.mxu0 }
0x172e   :  { %v1330_v51 = vadd.f32 %v1326_v54, %v2580_v25  ;;  %v1329_v2 = vadd.f32 %v1306_v24, %v2578_v35 }
0x1730   :  { %1890 = vtanh.f32 %v1330_v51 }
0x1731   :  { %1892 = vtanh.f32 %v1329_v2 }
0x1736   :  { %v1891_v57 = vpop.eup %1890 }
0x1737   :  { %1339 = vrot.lane.b32.xlu0 %v1891_v57, %s2051_s2  ;;  %v1893_v3 = vpop.eup %1892  ;;  %v1334_v10 = vmul.f32 0.5, %v1891_v57 }
0x1738   :  { %v1333_v4 = vmul.f32 0.5, %v1893_v3 }
0x1739   :  { %v1336_v17 = vadd.f32 0.5, %v1334_v10  ;;  %v1573_v10 = vld [vmem:[#allocation8 + $0x78] sm:$0xff] }
0x173a   :  { %v1335_v8 = vadd.f32 0.5, %v1333_v4  ;;  %1585 = vmatpush.msra.mxu0 %v1573_v10 }
0x173c   :  { %v1337_v20 = vmul.f32 %v1335_v8, %v1279_v63 }
0x17a9   :  { %v1340_v11 = vpop.permute.xlu0 %1339 }
0x17aa   :  { %v1342_v18 = vmul.f32 %v1340_v11, %v1335_v8 }
0x17ac   :  { %1344 = vrot.lane.b32.xlu1 %v1342_v18, %s2051_s2 }
0x181e   :  { %v1345_v22 = vpop.permute.xlu1 %1344 }
0x181f   :  { %v1347_v9 = vadd.f32 %v1345_v22, %v1337_v20 }
0x1821   :  { %1894 = vtanh.f32 %v1347_v9 }
0x1827   :  { %v1895_v25 = vpop.eup %1894 }
0x1828   :  { %1350 = vrot.lane.b32.xlu2 %v1895_v25, %s2051_s2 }
0x1882   :  { %v1351_v16 = vpop.permute.xlu2 %1350 }
0x1883   :  { %v2691_v28 = vmul.f32 %v1351_v16, %v1336_v17  ;;  %v1572_v17 = vld [vmem:[#allocation8 + $0x70] sm:$0xff]  ;;  %v1571_v16 = vld [vmem:[#allocation8 + $0x68] sm:$0xff] }
0x1884   :  { %1586 = vmatpush.msra.mxu0 %v1572_v17 }
0x1885   :  { %1768 = vmatmul.msk.f32.vlgmr.msra.gmra.mxu2 %vm112_vm0, %v2691_v28  ;;  %1769 = vmatmul.msk.f32.vlgmr.msra.gmra.mxu3 %vm112_vm0, %v2691_v28 }
0x1886   :  { %1587 = vmatpush.msra.mxu0 %v1571_v16 }
0x1908   :  { %v1394_v35 = vpop.f32.mrf.mxu3  ;;  %v1374_v52 = vpop.f32.mrf.mxu2 }
0x1909   :  { %v1398_v19 = vadd.f32 %v1394_v35, %v2584_v53  ;;  %v1397_v30 = vadd.f32 %v1374_v52, %v2582_v48  ;;  %v1562_v48 = vld [vmem:[#allocation8 + $0x20] sm:$0xff]  ;;  %v1569_v35 = vld [vmem:[#allocation8 + $0x58] sm:$0xff] }
0x190a   :  { %1629 = vmatpush.msra.mxu1 %v1562_v48 }
0x190b   :  { %1896 = vtanh.f32 %v1398_v19  ;;  %v1568_v19 = vld [vmem:[#allocation8 + $0x50] sm:$0xff] }
0x190c   :  { %1898 = vtanh.f32 %v1397_v30  ;;  %1630 = vmatpush.msra.mxu1 %v1561_v31 }
0x190e   :  { %1631 = vmatpush.msra.mxu1 %v1560_v46 }
0x1910   :  { %1632 = vmatpush.msra.mxu1 %v1559_v34 }
0x1911   :  { %v1897_v15 = vpop.eup %1896 }
0x1912   :  { %1407 = vrot.lane.b32.xlu0 %v1897_v15, %s2051_s2  ;;  %v1899_v23 = vpop.eup %1898  ;;  %1633 = vmatpush.msra.mxu1 %v1558_v41  ;;  %v1402_v40 = vmul.f32 0.5, %v1897_v15 }
0x1913   :  { %v1401_v32 = vmul.f32 0.5, %v1899_v23 }
0x1914   :  { %v1404_v43 = vadd.f32 0.5, %v1402_v40 }
0x1915   :  { %v1403_v33 = vadd.f32 0.5, %v1401_v32  ;;  %v1566_v32 = vld [vmem:[#allocation8 + $0x40] sm:$0xff] }
0x1917   :  { %v1405_v53 = vmul.f32 %v1403_v33, %v1347_v9 }
0x1984   :  { %v1408_v7 = vpop.permute.xlu0 %1407 }
0x1985   :  { %v1410_v1 = vmul.f32 %v1408_v7, %v1403_v33 }
0x1987   :  { %1412 = vrot.lane.b32.xlu1 %v1410_v1, %s2051_s2 }
0x19f9   :  { %v1413_v26 = vpop.permute.xlu1 %1412 }
0x19fa   :  { %v1415_v27 = vadd.f32 %v1413_v26, %v1405_v53 }
0x19fc   :  { %1900 = vtanh.f32 %v1415_v27 }
0x1a02   :  { %v1901_v42 = vpop.eup %1900 }
0x1a03   :  { %1418 = vrot.lane.b32.xlu2 %v1901_v42, %s2051_s2 }
0x1a5d   :  { %v1419_v47 = vpop.permute.xlu2 %1418 }
0x1a5e   :  { %v2702_v55 = vmul.f32 %v1419_v47, %v1404_v43 }
0x1a60   :  { %1770 = vmatmul.msk.f32.vlgmr.msrb.gmra.mxu0 %vm112_vm0, %v2702_v55  ;;  %1771 = vmatmul.msk.f32.vlgmr.msrb.gmra.mxu1 %vm112_vm0, %v2702_v55 }
0x1a68   :  { %1782 = vmatmul.msk.f32.vlgmr.msra.gmra.mxu1 %vm112_vm0, %v2599_v12 }
0x1a70   :  { %1783 = vmatmul.msk.f32.gmra.mxu1 %vm112_vm0, %v2626_v21 }
0x1a78   :  { %1784 = vmatmul.msk.f32.gmra.mxu1 %vm112_vm0, %v2653_v45 }
0x1a80   :  { %1785 = vmatmul.msk.f32.gmra.mxu1 %vm112_vm0, %v2680_v29 }
0x1a88   :  { %1786 = vmatmul.msk.f32.gmra.mxu1 %vm112_vm0, %v2691_v28 }
0x1a90   :  { %1787 = vmatmul.msk.f32.gmra.mxu1 %vm112_vm0, %v2702_v55 }
0x1add   :  { %v1462_v56 = vpop.f32.mrf.mxu1  ;;  %v1442_v61 = vpop.f32.mrf.mxu0 }
0x1ade   :  { %v1466_v59 = vadd.f32 %v1462_v56, %v2588_v6  ;;  %v1465_v58 = vadd.f32 %v1442_v61, %v2586_v5 }
0x1ae0   :  { %1902 = vtanh.f32 %v1466_v59 }
0x1ae1   :  { %1904 = vtanh.f32 %v1465_v58 }
0x1ae5   :  { %v1635_v37 = vpop.f32.mrf.mxu1 }
0x1ae6   :  { %v1903_v60 = vpop.eup %1902 }
0x1ae7   :  { %1475 = vrot.lane.b32.xlu0 %v1903_v60, %s2051_s2  ;;  %v1905_v62 = vpop.eup %1904  ;;  %v1470_v51 = vmul.f32 0.5, %v1903_v60 }
0x1ae8   :  { %v1469_v50 = vmul.f32 0.5, %v1905_v62 }
0x1ae9   :  { %v1472_v57 = vadd.f32 0.5, %v1470_v51 }
0x1aea   :  { %v1471_v63 = vadd.f32 0.5, %v1469_v50 }
0x1aec   :  { %v1473_v49 = vmul.f32 %v1471_v63, %v1415_v27 }
0x1aed   :  { %v1638_v53 = vpop.f32.mrf.mxu1 }
0x1af5   :  { %v1641_v31 = vpop.f32.mrf.mxu1 }
0x1afd   :  { %v1644_v41 = vpop.f32.mrf.mxu1 }
0x1b05   :  { %v1647_v43 = vpop.f32.mrf.mxu1 }
0x1b0d   :  { %v1650_v59 = vpop.f32.mrf.mxu1 }
0x1b59   :  { %v1476_v38 = vpop.permute.xlu0 %1475 }
0x1b5a   :  { %v1478_v0 = vmul.f32 %v1476_v38, %v1471_v63 }
0x1b5c   :  { %1480 = vrot.lane.b32.xlu1 %v1478_v0, %s2051_s2 }
0x1bce   :  { %v1481_v14 = vpop.permute.xlu1 %1480 }
0x1bcf   :  { %v1483_v54 = vadd.f32 %v1481_v14, %v1473_v49 }
0x1bd1   :  { %1906 = vtanh.f32 %v1483_v54 }
0x1bd7   :  { %v1907_v6 = vpop.eup %1906 }
0x1bd8   :  { %1486 = vrot.lane.b32.xlu2 %v1907_v6, %s2051_s2 }
0x1c32   :  { %v1487_v24 = vpop.permute.xlu2 %1486 }
0x1c33   :  { %v1489_v2 = vmul.f32 %v1487_v24, %v1472_v57 }
0x1c35   :  { %1772 = vmatmul.msk.f32.vlgmr.msrb.gmra.mxu2 %vm112_vm0, %v1489_v2  ;;  %1773 = vmatmul.msk.f32.vlgmr.msrb.gmra.mxu3 %vm112_vm0, %v1489_v2 }
0x1c36   :  { %1788 = vmatmul.msk.f32.gmra.mxu1 %vm112_vm0, %v1489_v2 }
0x1cb3   :  { %v1653_v62 = vpop.f32.mrf.mxu1 }
0x1cb8   :  { %v1530_v5 = vpop.f32.mrf.mxu3  ;;  %v1510_v8 = vpop.f32.mrf.mxu2 }
0x1cb9   :  { %v1534_v3 = vadd.f32 %v1530_v5, %v2592_v44  ;;  %v1533_v11 = vadd.f32 %v1510_v8, %v2590_v39  ;;  %v1570_v44 = vld [vmem:[#allocation8 + $0x60] sm:$0xff]  ;;  %v1567_v39 = vld [vmem:[#allocation8 + $0x48] sm:$0xff] }
0x1cba   :  { %1588 = vmatpush.msra.mxu0 %v1570_v44 }
0x1cbb   :  { %1908 = vtanh.f32 %v1534_v3 }
0x1cbc   :  { %1910 = vtanh.f32 %v1533_v11  ;;  %1589 = vmatpush.msra.mxu0 %v1569_v35 }
0x1cbe   :  { %1590 = vmatpush.msra.mxu0 %v1568_v19 }
0x1cc0   :  { %1591 = vmatpush.msra.mxu0 %v1567_v39 }
0x1cc1   :  { %v1909_v4 = vpop.eup %1908 }
0x1cc2   :  { %1543 = vrot.lane.b32.xlu0 %v1909_v4, %s2051_s2  ;;  %v1911_v18 = vpop.eup %1910  ;;  %1592 = vmatpush.msra.mxu0 %v1566_v32  ;;  %v1538_v33 = vmul.f32 0.5, %v1909_v4 }
0x1cc3   :  { %v1537_v20 = vmul.f32 0.5, %v1911_v18 }
0x1cc4   :  { %v1540_v7 = vadd.f32 0.5, %v1538_v33 }
0x1cc5   :  { %v1539_v22 = vadd.f32 0.5, %v1537_v20 }
0x1cc7   :  { %v1541_v15 = vmul.f32 %v1539_v22, %v1483_v54 }
0x1d34   :  { %v1544_v9 = vpop.permute.xlu0 %1543 }
0x1d35   :  { %v1546_v25 = vmul.f32 %v1544_v9, %v1539_v22 }
0x1d37   :  { %1548 = vrot.lane.b32.xlu1 %v1546_v25, %s2051_s2 }
0x1da9   :  { %v1549_v52 = vpop.permute.xlu1 %1548 }
0x1daa   :  { %v1551_v30 = vadd.f32 %v1549_v52, %v1541_v15 }
0x1dac   :  { %1912 = vtanh.f32 %v1551_v30 }
0x1db2   :  { %v1913_v23 = vpop.eup %1912 }
0x1db3   :  { %1554 = vrot.lane.b32.xlu2 %v1913_v23, %s2051_s2 }
0x1e0d   :  { %v1555_v1 = vpop.permute.xlu2 %1554 }
0x1e0e   :  { %v1557_v36 = vmul.f32 %v1555_v1, %v1540_v7 }
0x1e10   :  { %1774 = vmatmul.msk.f32.vlgmr.msra.gmra.mxu0 %vm112_vm0, %v1557_v36  ;;  %1789 = vmatmul.msk.f32.gmra.mxu1 %vm112_vm0, %v1557_v36 }
0x1e18   :  { %1775 = vmatmul.msk.f32.gmra.mxu0 %vm112_vm0, %v1489_v2 }
0x1e20   :  { %1776 = vmatmul.msk.f32.gmra.mxu0 %vm112_vm0, %v2702_v55 }
0x1e28   :  { %1777 = vmatmul.msk.f32.gmra.mxu0 %vm112_vm0, %v2691_v28 }
0x1e30   :  { %1778 = vmatmul.msk.f32.gmra.mxu0 %vm112_vm0, %v2680_v29 }
0x1e38   :  { %1779 = vmatmul.msk.f32.gmra.mxu0 %vm112_vm0, %v2653_v45 }
0x1e40   :  { %1780 = vmatmul.msk.f32.gmra.mxu0 %vm112_vm0, %v2626_v21 }
0x1e48   :  { %1781 = vmatmul.msk.f32.gmra.mxu0 %vm112_vm0, %v2599_v12 }
0x1e8d   :  { %v1594_v26 = vpop.f32.mrf.mxu0  ;;  %v1656_v0 = vpop.f32.mrf.mxu1 }
0x1e8e   :  { %v1636_v27 = vadd.f32 %v1635_v37, %v1594_v26 }
0x1e90   :  { %v1661_v42 = vadd.f32 %v1817_v13, %v1636_v27 }
0x1e92   :  { %1669 = vst [vmem:[#allocation10] sm:$0xff] %v1661_v42 }
0x1e95   :  { %v1597_v28 = vpop.f32.mrf.mxu0 }
0x1e96   :  { %v1639_v48 = vadd.f32 %v1638_v53, %v1597_v28 }
0x1e98   :  { %v1662_v29 = vadd.f32 %v1817_v13, %v1639_v48 }
0x1e9a   :  { %1670 = vst [vmem:[#allocation10 + $0x8] sm:$0xff] %v1662_v29 }
0x1e9d   :  { %v1600_v46 = vpop.f32.mrf.mxu0 }
0x1e9e   :  { %v1642_v45 = vadd.f32 %v1641_v31, %v1600_v46 }
0x1ea0   :  { %v1663_v34 = vadd.f32 %v1817_v13, %v1642_v45 }
0x1ea2   :  { %1671 = vst [vmem:[#allocation10 + $0x10] sm:$0xff] %v1663_v34 }
0x1ea5   :  { %v1603_v21 = vpop.f32.mrf.mxu0 }
0x1ea6   :  { %v1645_v40 = vadd.f32 %v1644_v41, %v1603_v21 }
0x1ea8   :  { %v1664_v12 = vadd.f32 %v1817_v13, %v1645_v40 }
0x1eaa   :  { %1672 = vst [vmem:[#allocation10 + $0x18] sm:$0xff] %v1664_v12 }
0x1ead   :  { %v1606_v47 = vpop.f32.mrf.mxu0 }
0x1eae   :  { %v1648_v55 = vadd.f32 %v1647_v43, %v1606_v47 }
0x1eb0   :  { %v1665_v56 = vadd.f32 %v1817_v13, %v1648_v55 }
0x1eb2   :  { %1673 = vst [vmem:[#allocation10 + $0x20] sm:$0xff] %v1665_v56 }
0x1eb5   :  { %v1609_v60 = vpop.f32.mrf.mxu0 }
0x1eb6   :  { %v1651_v61 = vadd.f32 %v1650_v59, %v1609_v60 }
0x1eb8   :  { %v1666_v58 = vadd.f32 %v1817_v13, %v1651_v61 }
0x1eba   :  { %1674 = vst [vmem:[#allocation10 + $0x28] sm:$0xff] %v1666_v58 }
0x1ebd   :  { %v1612_v50 = vpop.f32.mrf.mxu0 }
0x1ebe   :  { %v1654_v63 = vadd.f32 %v1653_v62, %v1612_v50 }
0x1ec0   :  { %v1667_v38 = vadd.f32 %v1817_v13, %v1654_v63 }
0x1ec2   :  { %1675 = vst [vmem:[#allocation10 + $0x30] sm:$0xff] %v1667_v38 }
0x1ec5   :  { %v1615_v49 = vpop.f32.mrf.mxu0 }
0x1ec6   :  { %v1657_v14 = vadd.f32 %v1656_v0, %v1615_v49 }
0x1ec8   :  { %v1668_v54 = vadd.f32 %v1817_v13, %v1657_v14 }
0x1eca   :  { %1676 = vst [vmem:[#allocation10 + $0x38] sm:$0xff] %v1668_v54 }
0x1ecb   :  { %1689 = dma.vmem_to_hbm [thread:$0]  %s1682_s11, 1024, %s1684_s14, [#allocation4], %s2046_s27, %s2046_s27, %s2047_s28  }
0x1ecc   :  { %2040 = dma.done.wait [#allocation4], 1024  }
0x1ecd   :  { %2041 = vsyncadd [#allocation4], 4294966272 }
0x1ece   :  { %1694 = vsyncpa [#allocation3], 1 }
0x1ecf   :  { %1695 = vsyncpa [#allocation6], 1 }
0x1ed0   :  { %1696 = vsyncpa [#allocation9], 1 }
0x1ed1   :  { %1697 = vsyncpa [#allocation4], 1 }

</bundles_post_ra>
